<compile_context>
chip_gen: v7x
topology: tpu7x:2x2x1
jax: 0.10.0
libtpu: 0.0.40
codegen_flags: <defaults>
</compile_context>

<pallas_src>
import functools

import jax
import jax.numpy as jnp
from jax.experimental import pallas as pl
from jax.experimental.pallas import tpu as pltpu

LANE = 128
SUBLANE = 8


def _round_up(x, m):
    return ((x + m - 1) // m) * m


def attn_net_kernel(x_ref, w1_ref, b1_ref, w2_ref, b2_ref, a_ref):
    # x tile (tn, L): cast to bf16 in-kernel (cheap VPU work hidden under the MXU);
    # both matmuls accumulate in f32 on the MXU.
    x_bf = x_ref[...].astype(jnp.bfloat16)
    h = jnp.dot(x_bf, w1_ref[...], preferred_element_type=jnp.float32)   # (tn, D) f32
    h = jnp.tanh(h + b1_ref[...]).astype(jnp.bfloat16)                   # (tn, D) bf16
    a = jnp.dot(h, w2_ref[...], preferred_element_type=jnp.float32)      # (tn, nc_pad)
    a_ref[...] = (a + b2_ref[...]).astype(a_ref.dtype)


def prepare_params(w1, b1, w2, b2):
    """One-time parameter prep (call OUTSIDE the jitted forward).

    Casts w1 to bf16, biases to f32, and zero-pads the output projection to a
    lane-dense width (multiple of 128).  Returns (w1_bf, b1_f, w2_pad, b2_pad,
    n_classes).
    """
    L, D = w1.shape
    n_classes = w2.shape[1]
    nc_pad = _round_up(n_classes, LANE)

    w1_bf = jnp.asarray(w1, jnp.bfloat16)
    b1_f = jnp.asarray(b1, jnp.float32).reshape(1, D)
    w2_pad = jnp.zeros((D, nc_pad), jnp.bfloat16)
    w2_pad = w2_pad.at[:, :n_classes].set(jnp.asarray(w2, jnp.bfloat16))
    b2_pad = jnp.zeros((1, nc_pad), jnp.float32)
    b2_pad = b2_pad.at[:, :n_classes].set(jnp.asarray(b2, jnp.float32).reshape(1, n_classes))
    return w1_bf, b1_f, w2_pad, b2_pad, n_classes


@functools.partial(jax.jit, static_argnames=("n_classes", "tile_n"))
def attn_net_forward(x, w1_bf, b1_f, w2_pad, b2_pad, *, n_classes, tile_n=512):
    """Returns (A, x) like the PyTorch module.  A is always f32, shape (N, n_classes)."""
    N, L = x.shape
    D = w1_bf.shape[1]
    nc_pad = w2_pad.shape[1]

    # Row tile: multiple of 8 (sublane), clamped so the grid has >= 4 steps
    # (keeps both v7x TensorCores busy with >= 2 pipelined steps each, and gives
    # single-TC v5e/v6e real double-buffering at small bag sizes).
    tn = min(_round_up(tile_n, SUBLANE), _round_up(pl.cdiv(N, 4), SUBLANE))
    tn = max(SUBLANE, tn)
    grid_n = pl.cdiv(N, tn)

    a_pad = pl.pallas_call(
        attn_net_kernel,
        out_shape=jax.ShapeDtypeStruct((N, nc_pad), jnp.float32),
        grid_spec=pltpu.PrefetchScalarGridSpec(
            num_scalar_prefetch=0,
            grid=(grid_n,),
            in_specs=[
                pl.BlockSpec((tn, L), lambda i: (i, 0)),           # x rows (streamed, native dtype)
                pl.BlockSpec((L, D), lambda i: (0, 0)),            # w1 (bf16, resident)
                pl.BlockSpec((1, D), lambda i: (0, 0)),            # b1 (f32)
                pl.BlockSpec((D, nc_pad), lambda i: (0, 0)),       # w2 padded to 128 lanes (bf16)
                pl.BlockSpec((1, nc_pad), lambda i: (0, 0)),       # b2 padded (f32)
            ],
            out_specs=pl.BlockSpec((tn, nc_pad), lambda i: (i, 0)),
        ),
        compiler_params=pltpu.CompilerParams(
            dimension_semantics=("parallel",),
            # Real footprint at tn<=512 is ~3-5 MiB; 32 MiB is generous headroom and
            # safe on every generation (v7x physical VMEM is 64 MiB per TC).
            vmem_limit_bytes=32 * 1024 * 1024,
        ),
    )(x, w1_bf, b1_f, w2_pad, b2_pad)

    a = a_pad[:, :n_classes]
    return a, x


def init_params(key, L, D, n_classes, dtype=jnp.float32):
    k1, k2, k3, k4 = jax.random.split(key, 4)
    # Deterministic synthetic init (uniform, PyTorch-Linear-like bounds).
    bound1 = 1.0 / (L ** 0.5)
    bound2 = 1.0 / (D ** 0.5)
    w1 = jax.random.uniform(k1, (L, D), dtype, -bound1, bound1)
    b1 = jax.random.uniform(k2, (1, D), dtype, -bound1, bound1)
    w2 = jax.random.uniform(k3, (D, n_classes), dtype, -bound2, bound2)
    b2 = jax.random.uniform(k4, (1, n_classes), dtype, -bound2, bound2)
    return w1, b1, w2, b2


if __name__ == "__main__":
    # Module dims from the PyTorch spec (L=1024, D=256, n_classes=1); small ragged bag.
    N, L, D, n_classes = 600, 1024, 256, 1

    key = jax.random.PRNGKey(0)
    kx, kp = jax.random.split(key)
    x = jax.random.normal(kx, (N, L), jnp.float32)
    w1, b1, w2, b2 = init_params(kp, L, D, n_classes)

    # One-time parameter prep (outside jit — no per-call re-cast).
    w1_bf, b1_f, w2_pad, b2_pad, nc = prepare_params(w1, b1, w2, b2)

    a, x_out = attn_net_forward(x, w1_bf, b1_f, w2_pad, b2_pad, n_classes=nc, tile_n=512)
    a = jax.block_until_ready(a)
    x_out = jax.block_until_ready(x_out)

    assert a.shape == (N, n_classes)
    assert a.dtype == jnp.float32
    assert x_out.shape == (N, L)

    # Reference 1: same bf16 casting as the kernel path (tight tolerance).
    x_bf = x.astype(jnp.bfloat16)
    h_ref = jnp.tanh(
        jnp.dot(x_bf, w1.astype(jnp.bfloat16), preferred_element_type=jnp.float32)
        + b1.reshape(1, D)
    ).astype(jnp.bfloat16)
    ref_bf = (
        jnp.dot(h_ref, w2.astype(jnp.bfloat16), preferred_element_type=jnp.float32)
        + b2.reshape(1, n_classes)
    )
    assert jnp.allclose(a, ref_bf, atol=5e-3, rtol=5e-3)

    # Reference 2: full f32 reference (loose tolerance, bounds the bf16 cast error).
    ref_f32 = jnp.tanh(x @ w1 + b1) @ w2 + b2
    assert jnp.allclose(a, ref_f32, atol=2e-2, rtol=2e-2)

    print("KERNEL_OK")
</pallas_src>

<mosaic_0001>
module attributes {stable_mosaic.version = 11 : i64} {
  func.func @attn_net_kernel(%arg0: i32, %arg1: memref<152x1024xf32, #tpu.memory_space<vmem>>, %arg2: memref<1024x256xbf16, #tpu.memory_space<vmem>>, %arg3: memref<1x256xf32, #tpu.memory_space<vmem>>, %arg4: memref<256x128xbf16, #tpu.memory_space<vmem>>, %arg5: memref<1x128xf32, #tpu.memory_space<vmem>>, %arg6: memref<152x128xf32, #tpu.memory_space<vmem>>) attributes {dimension_semantics = [#tpu.dimension_semantics<parallel>], iteration_bounds = array<i64: 4>, scalar_prefetch = 0 : i64, scratch_operands = 0 : i64, tpu.core_type = #tpu.core_type<tc>, window_params = [{transform_indices = @transform_0, window_bounds = array<i64: 152, 1024>}, {pipeline_mode = #tpu.pipeline_mode<synchronous>, transform_indices = @transform_1, window_bounds = array<i64: 1024, 256>}, {pipeline_mode = #tpu.pipeline_mode<synchronous>, transform_indices = @transform_2, window_bounds = array<i64: 1, 256>}, {pipeline_mode = #tpu.pipeline_mode<synchronous>, transform_indices = @transform_3, window_bounds = array<i64: 256, 128>}, {pipeline_mode = #tpu.pipeline_mode<synchronous>, transform_indices = @transform_4, window_bounds = array<i64: 1, 128>}, {transform_indices = @transform_5, window_bounds = array<i64: 152, 128>}]} {
    %c0 = arith.constant 0 : index
    %c0_0 = arith.constant 0 : index
    %0 = vector.load %arg1[%c0, %c0_0] : memref<152x1024xf32, #tpu.memory_space<vmem>>, vector<152x1024xf32>
    %1 = arith.truncf %0 : vector<152x1024xf32> to vector<152x1024xbf16>
    %c0_1 = arith.constant 0 : index
    %c0_2 = arith.constant 0 : index
    %2 = vector.load %arg2[%c0_1, %c0_2] : memref<1024x256xbf16, #tpu.memory_space<vmem>>, vector<1024x256xbf16>
    %cst = arith.constant dense<0.000000e+00> : vector<152x256xf32>
    %3 = tpu.matmul %1, %2, %cst {dimension_numbers = #tpu.dot_dimension_numbers<[1], [0], [0], [1], [0, 0, 1, 1], [], []>} : vector<152x1024xbf16>, vector<1024x256xbf16>, vector<152x256xf32> -> vector<152x256xf32>
    %c0_3 = arith.constant 0 : index
    %c0_4 = arith.constant 0 : index
    %4 = vector.load %arg3[%c0_3, %c0_4] : memref<1x256xf32, #tpu.memory_space<vmem>>, vector<1x256xf32>
    %5 = vector.broadcast %4 : vector<1x256xf32> to vector<152x256xf32>
    %6 = arith.addf %3, %5 : vector<152x256xf32>
    %7 = math.tanh %6 : vector<152x256xf32>
    %8 = arith.truncf %7 : vector<152x256xf32> to vector<152x256xbf16>
    %c0_5 = arith.constant 0 : index
    %c0_6 = arith.constant 0 : index
    %9 = vector.load %arg4[%c0_5, %c0_6] : memref<256x128xbf16, #tpu.memory_space<vmem>>, vector<256x128xbf16>
    %cst_7 = arith.constant dense<0.000000e+00> : vector<152x128xf32>
    %10 = tpu.matmul %8, %9, %cst_7 {dimension_numbers = #tpu.dot_dimension_numbers<[1], [0], [0], [1], [0, 0, 1, 1], [], []>} : vector<152x256xbf16>, vector<256x128xbf16>, vector<152x128xf32> -> vector<152x128xf32>
    %c0_8 = arith.constant 0 : index
    %c0_9 = arith.constant 0 : index
    %11 = vector.load %arg5[%c0_8, %c0_9] : memref<1x128xf32, #tpu.memory_space<vmem>>, vector<1x128xf32>
    %12 = vector.broadcast %11 : vector<1x128xf32> to vector<152x128xf32>
    %13 = arith.addf %10, %12 : vector<152x128xf32>
    %c0_10 = arith.constant 0 : index
    %c0_11 = arith.constant 0 : index
    %14 = vector.load %arg6[%c0_10, %c0_11] : memref<152x128xf32, #tpu.memory_space<vmem>>, vector<152x128xf32>
    tpu.vector_store %arg6[%c0_10, %c0_11], %13 {strides = array<i32>} : memref<152x128xf32, #tpu.memory_space<vmem>>, vector<152x128xf32>,
    return
  }
  func.func @transform_0(%arg0: i32) -> (i32, i32) {
    %c0_i32 = arith.constant 0 : i32
    %c0_i32_0 = arith.constant 0 : i32
    return %arg0, %c0_i32 : i32, i32
  }
  func.func @transform_1(%arg0: i32) -> (i32, i32) {
    %c0_i32 = arith.constant 0 : i32
    %c0_i32_0 = arith.constant 0 : i32
    %c0_i32_1 = arith.constant 0 : i32
    return %c0_i32, %c0_i32_0 : i32, i32
  }
  func.func @transform_2(%arg0: i32) -> (i32, i32) {
    %c0_i32 = arith.constant 0 : i32
    %c0_i32_0 = arith.constant 0 : i32
    %c0_i32_1 = arith.constant 0 : i32
    return %c0_i32, %c0_i32_0 : i32, i32
  }
  func.func @transform_3(%arg0: i32) -> (i32, i32) {
    %c0_i32 = arith.constant 0 : i32
    %c0_i32_0 = arith.constant 0 : i32
    %c0_i32_1 = arith.constant 0 : i32
    return %c0_i32, %c0_i32_0 : i32, i32
  }
  func.func @transform_4(%arg0: i32) -> (i32, i32) {
    %c0_i32 = arith.constant 0 : i32
    %c0_i32_0 = arith.constant 0 : i32
    %c0_i32_1 = arith.constant 0 : i32
    return %c0_i32, %c0_i32_0 : i32, i32
  }
  func.func @transform_5(%arg0: i32) -> (i32, i32) {
    %c0_i32 = arith.constant 0 : i32
    %c0_i32_0 = arith.constant 0 : i32
    return %arg0, %c0_i32 : i32, i32
  }
}

</mosaic_0001>

<bundles_post_ra>
// kernel: attn_net_forward.1
= control target key start
LH: loop header
LB: loop body
LE: loop exit
PB: predicated region body
PF: predicated region fallthrough
CT: control target
= control target key end

     0   :  { %s4569_s0 = inlined_call_operand.hbm [shape: f32[600,1024], index: 0, kind: input, shape index: {}]   ;;  %s4570_s1 = inlined_call_operand.hbm [shape: bf16[1024,256], index: 1, kind: input, shape index: {}]   ;;  %s4571_s2 = inlined_call_operand.hbm [shape: f32[1,256], index: 2, kind: input, shape index: {}]   ;;  %s4572_s3 = inlined_call_operand.hbm [shape: bf16[256,128], index: 3, kind: input, shape index: {}]   ;;  %s4573_s4 = inlined_call_operand.hbm [shape: f32[1,128], index: 4, kind: input, shape index: {}]   ;;  %s4574_s5 = inlined_call_operand.vmem [shape: f32[600,128], index: 5, kind: output, shape index: {}]  }
   0x1   :  { %4578 = sst [smem:[#allocation19_spill]] %s4570_s1 }
   0x2   :  { %10 = vsyncpa [#allocation3], 0 }
   0x3   :  { %12 = vsyncpa [#allocation3 + $0x1], 0 }
   0x4   :  { %13 = vsyncpa [#allocation5], 0 }
   0x5   :  { %14 = vsyncpa [#allocation8], 0  ;;  %s3679_s18 = smov 0   ;;  %s3681_s19 = smov 0  }
   0x6   :  { %s3683_s20 = smov 0   ;;  %s3685_s21 = smov 0  }
   0x7 LB: > { %s3698_s22 = sadd.s32 4294967295, %s3604_s21   ;;  %s3701_s23 = sadd.s32 1, %s3604_s21   ;;  %s3604_s21 = sphi %s3685_s21, %s4610_s21   ;;  %s3600_s20 = sphi %s3683_s20, %s4609_s20   ;;  %s3596_s19 = sphi %s3681_s19, %s4608_s19   ;;  %s3592_s18 = sphi %s3679_s18, %s4607_s18  }
   0x8   : > { %s24_s24 = ssub.s32 %s3604_s21, %s3701_s23  ;;  %s27_s25 = sadd.s32 1, %s3600_s20 }
   0x9   : > { %p25_p0 = scmp.eq.s32.totalorder %s24_s24, 0  ;;  %p34_p1 = scmp.ne.s32.totalorder %s3600_s20, %s3596_s19 }
   0xa   : > { %p35_p2 = scmp.eq.s32.totalorder %s3604_s21, 0  ;;  %p40_p3 = scmp.ne.s32.totalorder %s3596_s19, %s3592_s18 }
   0xb   : > { %s3711_s26 = scalar_select %p25_p0, %s3600_s20, %s27_s25  }
   0xc   : > { %p3713_p4 = por %p35_p2, %p34_p1  ;;  %p4575_p5 = scmp.eq.s32.totalorder %s3698_s22, 0 }
   0xd   : > { %p148_p6 = scmp.eq.s32.totalorder %s3698_s22, 3  ;;  %p2512_p7 = scmp.ge.s32.totalorder %s3604_s21, 1 }
   0xe   : > { %s4579_s27 = scalar_select %p3713_p4, 1, 0 }
   0xf   : > { %p3722_p8 = por %p4575_p5, %p40_p3  ;;  %p161_p9 = scmp.lt.s32.totalorder %s3604_s21, 5 }
  0x10   : > { %p3727_p10 = por %p148_p6, %p34_p1  ;;  %s3638_s6 = smov [#allocation4]  }
  0x11   : > { %s4580_s28 = scalar_select %p3722_p8, 1, 0 }
  0x12   : > { %s4581_s29 = scalar_select %p3727_p10, 1, 0 }
  0x13   : > { %p3731_p11 = pnand %p2512_p7, %p161_p9  ;;  %s173_s7 = sshll.u32 %s3638_s6, 4  ;;  %s174_s7 = int_to_ptr.vmem [resolvable:$true] %s173_s7 }
  0x14   : > { %s3639_s9 = smov [#allocation7]   ;;  %s4584_s1 = sld [smem:[#allocation19_spill]] }
  0x15   : > { %s4582_s30 = scalar_select %p3731_p11, 1, 0 }
  0x16   : > { %p2974_p12 = pneg %p3731_p11  ;;  %s197_s10 = sshll.u32 %s3639_s9, 4  ;;  %s3743_s10 = int_to_ptr.vmem [resolvable:$true] %s197_s10 }
  0x18   : > { %p3739_p13 = pnand %p2974_p12, %p4575_p5 }
  0x1a   : > { %s3390_s13 = scalar_lea.hbm %s4584_s1, 16384  ;;  %p3753_p1 = pneg %p3739_p13 }
  0x1b   : > { %p3391_p0 = scmp.ne.s32.totalorder %s4584_s1, %s3390_s13  ;;  %p3397_p6 = scmp.lt.u32.totalorder %s3390_s13, %s4584_s1 }
  0x1d   : > { %p3393_p2 = pnand %p3753_p1, %p3391_p0 }
  0x1f   : > { %p3394_p3 = pneg %p3393_p2 }
  0x21   : > { %p3399_p7 = pnand %p3397_p6, %p3394_p3 }
  0x23   : > { %3402 = shalt.err (!%p3399_p7)
}
  0x24   : > { %s3403_s24 = scalar_lea.vmem %s174_s7, 16384  ;;  %p3411_p10 = scmp.lt.s32.totalorder %s174_s7, %s174_s7 }
  0x25   : > { %p3404_p9 = scmp.ne.s32.totalorder %s174_s7, %s3403_s24  ;;  %p3412_p8 = scmp.lt.s32.totalorder %s3403_s24, %s3403_s24 }
  0x27   : > { %p3406_p12 = pnand %p3404_p9, %p3753_p1  ;;  %p3413_p11 = por %p3412_p8, %p3411_p10 }
  0x29   : > { %p3407_p5 = pneg %p3406_p12 }
  0x2b   : > { %p3414_p4 = pnand %p3413_p11, %p3407_p5 }
  0x2d   : > { %3417 = shalt.err (!%p3414_p4)
}
  0x2e   : > { %s3640_s25 = smov 128   ;;  %s3641_s6 = smov 8  }
  0x2f   : > { %2977 = dma.hbm_to_vmem [thread:$0]  (!%p3739_p13), %s4584_s1, 16384, %s174_s7, [#allocation5], %s3640_s25, %s3640_s25, %s3641_s6  }
  0x30   : > { %s3418_s14 = scalar_lea.hbm %s4572_s3, 2048 }
  0x31   : > { %p3419_p0 = scmp.ne.s32.totalorder %s4572_s3, %s3418_s14  ;;  %p3425_p8 = scmp.lt.u32.totalorder %s3418_s14, %s4572_s3 }
  0x33   : > { %p3421_p5 = pnand %p3419_p0, %p3753_p1 }
  0x35   : > { %p3422_p4 = pneg %p3421_p5 }
  0x37   : > { %p3427_p10 = pnand %p3425_p8, %p3422_p4 }
  0x39   : > { %3430 = shalt.err (!%p3427_p10)
}
  0x3a   : > { %s3431_s7 = scalar_lea.vmem %s3743_s10, 2048  ;;  %p3439_p6 = scmp.lt.s32.totalorder %s3743_s10, %s3743_s10 }
  0x3b   : > { %p3432_p11 = scmp.ne.s32.totalorder %s3743_s10, %s3431_s7  ;;  %p3440_p7 = scmp.lt.s32.totalorder %s3431_s7, %s3431_s7 }
  0x3d   : > { %p3434_p2 = pnand %p3432_p11, %p3753_p1  ;;  %p3441_p9 = por %p3440_p7, %p3439_p6 }
  0x3f   : > { %p3435_p3 = pneg %p3434_p2 }
  0x41   : > { %p3442_p12 = pnand %p3441_p9, %p3435_p3 }
  0x43   : > { %3445 = shalt.err (!%p3442_p12)
}
  0x44   : > { %s3642_s25 = smov 64   ;;  %s3643_s6 = smov 4  }
  0x45   : > { %2983 = dma.hbm_to_vmem [thread:$0]  (!%p3739_p13), %s4572_s3, 2048, %s3743_s10, [#allocation8], %s3642_s25, %s3642_s25, %s3643_s6  }
  0x46   : > { %s3644_s12 = smov [#allocation6]   ;;  %s3645_s14 = smov [#allocation9]  }
  0x47   : > { %s187_s13 = sshll.u32 %s3644_s12, 4  ;;  %s211_s15 = sshll.u32 %s3645_s14, 4  ;;  %s188_s13 = int_to_ptr.vmem [resolvable:$true] %s187_s13  ;;  %s3792_s15 = int_to_ptr.vmem [resolvable:$true] %s211_s15 }
  0x48   : > { %s3446_s24 = scalar_lea.hbm %s4571_s2, 32 }
  0x49   : > { %p3447_p0 = scmp.ne.s32.totalorder %s4571_s2, %s3446_s24  ;;  %p3453_p8 = scmp.lt.u32.totalorder %s3446_s24, %s4571_s2 }
  0x4b   : > { %p3449_p5 = pnand %p3447_p0, %p3753_p1 }
  0x4d   : > { %p3450_p4 = pneg %p3449_p5 }
  0x4f   : > { %p3455_p10 = pnand %p3453_p8, %p3450_p4 }
  0x51   : > { %3458 = shalt.err (!%p3455_p10)
}
  0x52   : > { %s3459_s25 = scalar_lea.vmem %s188_s13, 32  ;;  %p3467_p6 = scmp.lt.s32.totalorder %s188_s13, %s188_s13 }
  0x53   : > { %p3460_p11 = scmp.ne.s32.totalorder %s188_s13, %s3459_s25  ;;  %p3468_p7 = scmp.lt.s32.totalorder %s3459_s25, %s3459_s25 }
  0x55   : > { %p3462_p2 = pnand %p3460_p11, %p3753_p1  ;;  %p3469_p9 = por %p3468_p7, %p3467_p6 }
  0x57   : > { %p3463_p3 = pneg %p3462_p2 }
  0x59   : > { %p3470_p12 = pnand %p3469_p9, %p3463_p3 }
  0x5b   : > { %3473 = shalt.err (!%p3470_p12)
}
  0x5c   : > { %2980 = dma.hbm_to_vmem [thread:$0]  (!%p3739_p13), %s4571_s2, 32, %s188_s13, [#allocation5]  }
  0x5d   : > { %s3474_s14 = scalar_lea.hbm %s4573_s4, 16 }
  0x5e   : > { %p3475_p0 = scmp.ne.s32.totalorder %s4573_s4, %s3474_s14  ;;  %p3481_p8 = scmp.lt.u32.totalorder %s3474_s14, %s4573_s4 }
  0x60   : > { %p3477_p5 = pnand %p3475_p0, %p3753_p1 }
  0x62   : > { %p3478_p4 = pneg %p3477_p5 }
  0x64   : > { %p3483_p10 = pnand %p3481_p8, %p3478_p4 }
  0x66   : > { %3486 = shalt.err (!%p3483_p10)
}
  0x67   : > { %s3487_s13 = scalar_lea.vmem %s3792_s15, 16  ;;  %s3494_s9 = scalar_lea.vmem %s3792_s15, 32 }
  0x68   : > { %p3488_p11 = scmp.ne.s32.totalorder %s3792_s15, %s3487_s13  ;;  %p3495_p6 = scmp.lt.s32.totalorder %s3792_s15, %s3792_s15 }
  0x69   : > { %p3496_p7 = scmp.lt.s32.totalorder %s3494_s9, %s3487_s13 }
  0x6a   : > { %p3490_p2 = pnand %p3488_p11, %p3753_p1 }
  0x6b   : > { %p3497_p9 = por %p3496_p7, %p3495_p6 }
  0x6c   : > { %p3491_p3 = pneg %p3490_p2 }
  0x6e   : > { %p3498_p12 = pnand %p3497_p9, %p3491_p3 }
  0x70   : > { %3501 = shalt.err (!%p3498_p12)
}
  0x71   : > { %2986 = dma.hbm_to_vmem [thread:$0]  (!%p3739_p13), %s4573_s4, 16, %s3792_s15, [#allocation8]  }
  0x72   : > { %p2517_p0 = scmp.ge.s32.totalorder %s3604_s21, 4 }
  0x73   : > { %p4586_p1 = scmp.ne.s32.totalorder (!%p2517_p0), %s4579_s27, 0 }
  0x74   : > { %218 = sbr.rel (%p2517_p0) target bundleno = 158 (0x9e), region = 32 }
  0x7b   : > { %221 = sbr.rel (!%p4586_p1) target bundleno = 158 (0x9e), region = 36  ;;  %s222_s16 = sand.u32 (%p4586_p1), 1, %s3600_s20  }
  0x7c   : > { %s227_s1 = smul.u32 (%p4586_p1), 19, %s3604_s21  ;;  %s3844_s14 = scalar_lea.sflag (%p4586_p1), [#allocation3], %s222_s16 }
  0x7d   : > { %s2954_s6 = smul.u32 (%p4586_p1), 1216, %s222_s16 }
  0x7e   : > { %s228_s11 = ssub.s32 (%p4586_p1), 75, %s227_s1 }
  0x7f   : > { %p229_p5 = scmp.lt.s32.totalorder (%p4586_p1), %s228_s11, 19  ;;  %s226_s15 = scalar_lea.vmem (%p4586_p1), [#allocation2], %s2954_s6 }
  0x82   : > { %s4612_s11 = smov (!%p229_p5, %s228_s11), 19 }
  0x83   : > { %s3841_s8 = sshll.u32 %s4612_s11, 10 }
  0x84   : > { %s234_s12 = ssub.s32 19456, %s3841_s8 }
  0x85   : > { %235 = vsyncadd %s3844_s14, %s234_s12  ;;  %p2520_p13 = scmp.ne.s32.totalorder %s3841_s8, 0  ;;  %s2691_s27 = smul.u32 19456, %s3604_s21 }
  0x86   : > { %s241_s17 = sshll.u32 %s226_s15, 4  ;;  %s3506_s21 = scalar_lea.hbm %s4569_s0, 76800  ;;  %s3854_s17 = int_to_ptr.vmem [resolvable:$true] %s241_s17 }
  0x87   : > { %s3852_s7 = scalar_lea.hbm %s4569_s0, %s2691_s27 }
  0x88   : > { %s3502_s13 = scalar_lea.hbm %s3852_s7, %s3841_s8  ;;  %p3507_p11 = scmp.lt.u32.totalorder %s3852_s7, %s4569_s0 }
  0x89   : > { %p3503_p4 = scmp.ne.s32.totalorder %s3852_s7, %s3502_s13  ;;  %p3508_p2 = scmp.lt.u32.totalorder %s3506_s21, %s3502_s13 }
  0x8a   : > { %p3510_p6 = scmp.lt.u32.totalorder %s3502_s13, %s3852_s7 }
  0x8b   : > { %p3504_p8 = pnand %p3503_p4, %p2520_p13  ;;  %p3509_p3 = por %p3508_p2, %p3507_p11 }
  0x8d   : > { %p3505_p10 = pneg %p3504_p8  ;;  %p3511_p7 = por %p3510_p6, %p3509_p3 }
  0x8f   : > { %p3512_p9 = pnand %p3511_p7, %p3505_p10 }
  0x91   : > { %3515 = shalt.err (!%p3512_p9)
}
  0x92   : > { %s3516_s1 = scalar_lea.vmem %s3854_s17, %s3841_s8  ;;  %s3646_s6 = smov [#allocation2]  }
  0x93   : > { %p3517_p12 = scmp.ne.s32.totalorder %s3854_s17, %s3516_s1  ;;  %s3520_s11 = sshll.u32 %s3646_s6, 4  ;;  %s3521_s11 = int_to_ptr.vmem [resolvable:$false] %s3520_s11 }
  0x94   : > { %s3522_s12 = scalar_lea.vmem %s3521_s11, 38912  ;;  %p3523_p5 = scmp.lt.s32.totalorder %s3854_s17, %s3521_s11 }
  0x95   : > { %p3518_p0 = pnand %p3517_p12, %p2520_p13  ;;  %p3524_p4 = scmp.lt.s32.totalorder %s3522_s12, %s3516_s1 }
  0x97   : > { %p3519_p1 = pneg %p3518_p0  ;;  %p3525_p8 = por %p3524_p4, %p3523_p5 }
  0x99   : > { %p3526_p11 = pnand %p3525_p8, %p3519_p1 }
  0x9b   : > { %3529 = shalt.err (!%p3526_p11)
}
  0x9c   : > { %s3647_s15 = smov 1024   ;;  %s3648_s27 = smov 64  }
  0x9d   : > { %247 = dma.hbm_to_vmem [thread:$0]  (%p2520_p13), %s3852_s7, %s3841_s8, %s3854_s17, %s3844_s14, %s3647_s15, %s3647_s15, %s3648_s27  }
  0x9e PF: > { %p4587_p10 = scmp.ne.s32.totalorder %s4582_s30, 0 }
  0xa0   : > { %253 = sbr.rel (%p4587_p10) target bundleno = 988 (0x3dc), region = 40 }
  0xa7   : > { %s3884_s18 = sand.u32 1, %s3596_s19   ;;  %p4588_p2 = scmp.ne.s32.totalorder %s4580_s28, 0 }
  0xa8   : > { %s2955_s24 = smul.u32 1216, %s3884_s18  ;;  %s256_s13 = scalar_lea.sflag [#allocation3], %s3884_s18 }
  0xaa   : > { %s3888_s9 = scalar_lea.vmem [#allocation2], %s2955_s24 }
  0xab   : > { %3579 = dma.done.wait (%p4588_p2), %s256_s13, 19456  }
  0xac   : > { %3581 = vsyncadd (%p4588_p2), %s256_s13, 4294947840  ;;  %p4589_p13 = scmp.eq.s32.totalorder %s3698_s22, 0 }
  0xae   : > { %3583 = dma.done.wait (%p4589_p13), [#allocation5], 16416   ;;  %p4590_p3 = pmov %p4589_p13 }
  0xb0   : > { %3585 = vsyncadd (%p4590_p3), [#allocation5], 4294950880  ;;  %p4591_p6 = pmov %p4590_p3 }
  0xb1   : > { %p4592_p7 = pmov %p4590_p3 }
  0xb2   : > { %3587 = dma.done.wait (%p4591_p6), [#allocation8], 2064  }
  0xb3   : > { %3589 = vsyncadd (%p4592_p7), [#allocation8], 4294965232  ;;  %v3102_v0 = vld [vmem:[#allocation4 + $0x104] ss:$8 sps:$4 sm:$0xff]   ;;  %v3104_v1 = vld [vmem:[#allocation4 + $0x100] ss:$8 sps:$4 sm:$0xff]  }
  0xb4   : > { %1456 = vmatprep.subr.bf16.mxu0 %v3102_v0  ;;  %v3105_v2 = vld [vmem:[#allocation4 + $0x114] ss:$8 sps:$4 sm:$0xff]   ;;  %v3107_v3 = vld [vmem:[#allocation4 + $0x110] ss:$8 sps:$4 sm:$0xff]   ;;  %v3108_v4 = vld [vmem:[#allocation4 + $0x124] ss:$8 sps:$4 sm:$0xff]  }
  0xb5   : > { %1457 = vmatpush1.bf16.msra.mxu0 %v3104_v1  ;;  %v3110_v5 = vld [vmem:[#allocation4 + $0x120] ss:$8 sps:$4 sm:$0xff]   ;;  %v3111_v6 = vld [vmem:[#allocation4 + $0x134] ss:$8 sps:$4 sm:$0xff]   ;;  %v3113_v7 = vld [vmem:[#allocation4 + $0x130] ss:$8 sps:$4 sm:$0xff]  }
  0xb6   : > { %1458 = vmatprep.subr.bf16.mxu0 %v3105_v2  ;;  %v3114_v8 = vld [vmem:[#allocation4 + $0x144] ss:$8 sps:$4 sm:$0xff]   ;;  %v3116_v9 = vld [vmem:[#allocation4 + $0x140] ss:$8 sps:$4 sm:$0xff]   ;;  %v3117_v12 = vld [vmem:[#allocation4 + $0x154] ss:$8 sps:$4 sm:$0xff]  }
  0xb7   : > { %v3135_v10 = vld [vmem:[#allocation4 + $0x4] ss:$8 sps:$4 sm:$0xff]   ;;  %v3137_v11 = vld [vmem:[#allocation4] ss:$8 sps:$4 sm:$0xff]   ;;  %v3141_v13 = vld [vmem:[#allocation4 + $0x14] ss:$8 sps:$4 sm:$0xff]  }
  0xb8   : > { %1325 = vmatprep.subr.bf16.mxu1 %v3135_v10  ;;  %v3143_v14 = vld [vmem:[#allocation4 + $0x10] ss:$8 sps:$4 sm:$0xff]   ;;  %v3120_v16 = vld [vmem:[#allocation4 + $0x164] ss:$8 sps:$4 sm:$0xff]   ;;  %v3149_v18 = vld [vmem:[#allocation4 + $0x20] ss:$8 sps:$4 sm:$0xff]  }
  0xb9   : > { %1459 = vmatpush1.bf16.msra.mxu0 %v3107_v3  ;;  %1326 = vmatpush1.bf16.msra.mxu1 %v3137_v11  ;;  %v3119_v15 = vld [vmem:[#allocation4 + $0x150] ss:$8 sps:$4 sm:$0xff]   ;;  %v3147_v17 = vld [vmem:[#allocation4 + $0x24] ss:$8 sps:$4 sm:$0xff]   ;;  %v3122_v19 = vld [vmem:[#allocation4 + $0x160] ss:$8 sps:$4 sm:$0xff]  }
  0xba   : > { %1460 = vmatprep.subr.bf16.mxu0 %v3108_v4  ;;  %1327 = vmatprep.subr.bf16.mxu1 %v3141_v13  ;;  %v3153_v20 = vld [vmem:[#allocation4 + $0x34] ss:$8 sps:$4 sm:$0xff]   ;;  %v3155_v22 = vld [vmem:[#allocation4 + $0x30] ss:$8 sps:$4 sm:$0xff]   ;;  %v3159_v24 = vld [vmem:[#allocation4 + $0x44] ss:$8 sps:$4 sm:$0xff]  }
  0xbb   : > { %v3123_v21 = vld [vmem:[#allocation4 + $0x174] ss:$8 sps:$4 sm:$0xff]   ;;  %v3125_v23 = vld [vmem:[#allocation4 + $0x170] ss:$8 sps:$4 sm:$0xff]   ;;  %v3126_v25 = vld [vmem:[#allocation4 + $0x184] ss:$8 sps:$4 sm:$0xff]  }
  0xbc   : > { %v316_v26 = vld [vmem:[%s3888_s9 + $0x18] sm:$0xff]  ;;  %v3161_v28 = vld [vmem:[#allocation4 + $0x40] ss:$8 sps:$4 sm:$0xff]   ;;  %v3171_v35 = vld [vmem:[#allocation4 + $0x64] ss:$8 sps:$4 sm:$0xff]   ;;  %s2956_s28 = smul.u32 152, %s3884_s18 }
  0xbd   : > { %1461 = vmatpush1.bf16.msra.mxu0 %v3110_v5  ;;  %1328 = vmatpush1.bf16.msra.mxu1 %v3143_v14  ;;  %v324_v27 = vld [vmem:[%s3888_s9 + $0x58] sm:$0xff]  ;;  %v3128_v30 = vld [vmem:[#allocation4 + $0x180] ss:$8 sps:$4 sm:$0xff]   ;;  %v3132_v36 = vld [vmem:[#allocation4 + $0x1a4] ss:$8 sps:$4 sm:$0xff]   ;;  %p4603_p9 = scmp.ne.s32.totalorder %s4581_s29, 0 }
  0xbe   : > { %1462 = vmatprep.subr.bf16.mxu0 %v3111_v6  ;;  %1329 = vmatprep.subr.bf16.mxu1 %v3147_v17  ;;  %v468_v29 = vpack.c.bf16 %v324_v27, %v316_v26  ;;  %v3165_v31 = vld [vmem:[#allocation4 + $0x54] ss:$8 sps:$4 sm:$0xff]   ;;  %v3167_v33 = vld [vmem:[#allocation4 + $0x50] ss:$8 sps:$4 sm:$0xff]   ;;  %v3173_v37 = vld [vmem:[#allocation4 + $0x60] ss:$8 sps:$4 sm:$0xff]  }
  0xbf   : > { %v3129_v32 = vld [vmem:[#allocation4 + $0x194] ss:$8 sps:$4 sm:$0xff]   ;;  %v3131_v34 = vld [vmem:[#allocation4 + $0x190] ss:$8 sps:$4 sm:$0xff]   ;;  %v3134_v38 = vld [vmem:[#allocation4 + $0x1a0] ss:$8 sps:$4 sm:$0xff]  }
  0xc0   : > { %1488 = vmatprep.mubr.bf16.mxu0 %v468_v29  ;;  %v3177_v39 = vld [vmem:[#allocation4 + $0x74] ss:$8 sps:$4 sm:$0xff]   ;;  %v3179_v41 = vld [vmem:[#allocation4 + $0x70] ss:$8 sps:$4 sm:$0xff]   ;;  %v3180_v43 = vld [vmem:[#allocation4 + $0x84] ss:$8 sps:$4 sm:$0xff]  }
  0xc1   : > { %1463 = vmatpush1.bf16.msra.mxu0 %v3113_v7  ;;  %1330 = vmatpush1.bf16.msra.mxu1 %v3149_v18  ;;  %v3138_v40 = vld [vmem:[#allocation4 + $0x1b4] ss:$8 sps:$4 sm:$0xff]   ;;  %v3140_v42 = vld [vmem:[#allocation4 + $0x1b0] ss:$8 sps:$4 sm:$0xff]   ;;  %v3144_v44 = vld [vmem:[#allocation4 + $0x1c4] ss:$8 sps:$4 sm:$0xff]  }
  0xc2   : > { %1464 = vmatprep.subr.bf16.mxu0 %v3114_v8  ;;  %1331 = vmatprep.subr.bf16.mxu1 %v3153_v20  ;;  %v3185_v45 = vld [vmem:[#allocation4 + $0x80] ss:$8 sps:$4 sm:$0xff]   ;;  %v3186_v47 = vld [vmem:[#allocation4 + $0x94] ss:$8 sps:$4 sm:$0xff]   ;;  %v3188_v49 = vld [vmem:[#allocation4 + $0x90] ss:$8 sps:$4 sm:$0xff]  }
  0xc3   : > { %v3146_v46 = vld [vmem:[#allocation4 + $0x1c0] ss:$8 sps:$4 sm:$0xff]   ;;  %v3150_v48 = vld [vmem:[#allocation4 + $0x1d4] ss:$8 sps:$4 sm:$0xff]   ;;  %v3152_v50 = vld [vmem:[#allocation4 + $0x1d0] ss:$8 sps:$4 sm:$0xff]  }
  0xc4   : > { %v3192_v51 = vld [vmem:[#allocation4 + $0xa4] ss:$8 sps:$4 sm:$0xff]   ;;  %v3194_v53 = vld [vmem:[#allocation4 + $0xa0] ss:$8 sps:$4 sm:$0xff]   ;;  %v3198_v55 = vld [vmem:[#allocation4 + $0xb4] ss:$8 sps:$4 sm:$0xff]  }
  0xc5   : > { %1465 = vmatpush1.bf16.msra.mxu0 %v3116_v9  ;;  %1332 = vmatpush1.bf16.msra.mxu1 %v3155_v22  ;;  %v3156_v52 = vld [vmem:[#allocation4 + $0x1e4] ss:$8 sps:$4 sm:$0xff]   ;;  %v3158_v54 = vld [vmem:[#allocation4 + $0x1e0] ss:$8 sps:$4 sm:$0xff]   ;;  %v3162_v56 = vld [vmem:[#allocation4 + $0x1f4] ss:$8 sps:$4 sm:$0xff]  }
  0xc6   : > { %1466 = vmatprep.subr.bf16.mxu0 %v3117_v12  ;;  %1333 = vmatprep.subr.bf16.mxu1 %v3159_v24  ;;  %v3164_v57 = vld [vmem:[#allocation4 + $0x1f0] ss:$8 sps:$4 sm:$0xff]   ;;  %v3204_v61 = vld [vmem:[#allocation4 + $0xc4] ss:$8 sps:$4 sm:$0xff]   ;;  %v3206_v2 = vld [vmem:[#allocation4 + $0xc0] ss:$8 sps:$4 sm:$0xff]  }
  0xc7   : > { %v315_v58 = vld [vmem:[%s3888_s9 + $0x10] sm:$0xff]  ;;  %v3170_v62 = vld [vmem:[#allocation4 + $0x204] ss:$8 sps:$4 sm:$0xff]   ;;  %v332_v63 = vld [vmem:[%s3888_s9 + $0x98] sm:$0xff]  ;;  %s4426_s30 = scalar_lea.vmem [#allocation10], %s2956_s28   ;;  %s2180_s8 = smul.u32 (%p4603_p9), 19, %s3698_s22 }
  0xc8   : > { %v3200_v59 = vld [vmem:[#allocation4 + $0xb0] ss:$8 sps:$4 sm:$0xff]   ;;  %v314_v3 = vld [vmem:[%s3888_s9 + $0x8] sm:$0xff]  ;;  %v3176_v5 = vld [vmem:[#allocation4 + $0x214] ss:$8 sps:$4 sm:$0xff]   ;;  %s2690_s14 = smul.u32 (%p4603_p9), 152, %s3698_s22 }
  0xc9   : > { %1467 = vmatpush1.bf16.msra.mxu0 %v3119_v15  ;;  %1334 = vmatpush1.bf16.msra.mxu1 %v3161_v28  ;;  %v323_v60 = vld [vmem:[%s3888_s9 + $0x50] sm:$0xff]  ;;  %v340_v0 = vld [vmem:[%s3888_s9 + $0xd8] sm:$0xff]  ;;  %v3168_v4 = vld [vmem:[#allocation4 + $0x200] ss:$8 sps:$4 sm:$0xff]   ;;  %s2181_s17 = ssub.s32 (%p4603_p9), 75, %s2180_s8 }
  0xca   : > { %1468 = vmatprep.subr.bf16.mxu0 %v3120_v16  ;;  %1335 = vmatprep.subr.bf16.mxu1 %v3165_v31  ;;  %v467_v1 = vpack.c.bf16 %v323_v60, %v315_v58  ;;  %v476_v6 = vpack.c.bf16 %v340_v0, %v332_v63  ;;  %v322_v7 = vld [vmem:[%s3888_s9 + $0x48] sm:$0xff]  ;;  %v3207_v8 = vld [vmem:[#allocation4 + $0xd4] ss:$8 sps:$4 sm:$0xff]   ;;  %v3174_v9 = vld [vmem:[#allocation4 + $0x210] ss:$8 sps:$4 sm:$0xff]   ;;  %p2182_p12 = scmp.lt.s32.totalorder (%p4603_p9), %s2181_s17, 19  ;;  %s4472_s21 = scalar_lea.vmem (%p4603_p9), %s4574_s5, %s2690_s14  }
  0xcb   : > { %v466_v10 = vpack.c.bf16 %v322_v7, %v314_v3  ;;  %v331_v11 = vld [vmem:[%s3888_s9 + $0x90] sm:$0xff]  ;;  %v3184_v14 = vld [vmem:[#allocation4 + $0x224] ss:$8 sps:$4 sm:$0xff]   ;;  %v348_v15 = vld [vmem:[%s3888_s9 + $0x118] sm:$0xff] }
  0xcc   : > { %v339_v12 = vld [vmem:[%s3888_s9 + $0xd0] sm:$0xff]  ;;  %v3213_v16 = vld [vmem:[#allocation4 + $0xe4] ss:$8 sps:$4 sm:$0xff]   ;;  %v356_v17 = vld [vmem:[%s3888_s9 + $0x158] sm:$0xff] }
  0xcd   : > { %1469 = vmatpush1.bf16.msra.mxu0 %v3122_v19  ;;  %1336 = vmatpush1.bf16.msra.mxu1 %v3167_v33  ;;  %v3212_v13 = vld [vmem:[#allocation4 + $0xd0] ss:$8 sps:$4 sm:$0xff]   ;;  %v475_v18 = vpack.c.bf16 %v339_v12, %v331_v11  ;;  %v3215_v19 = vld [vmem:[#allocation4 + $0xe0] ss:$8 sps:$4 sm:$0xff]   ;;  %v3191_v22 = vld [vmem:[#allocation4 + $0x234] ss:$8 sps:$4 sm:$0xff]  }
  0xce   : > { %1470 = vmatprep.subr.bf16.mxu0 %v3123_v21  ;;  %1337 = vmatprep.subr.bf16.mxu1 %v3171_v35  ;;  %v3182_v20 = vld [vmem:[#allocation4 + $0x220] ss:$8 sps:$4 sm:$0xff]   ;;  %v484_v21 = vpack.c.bf16 %v356_v17, %v348_v15  ;;  %v3221_v24 = vld [vmem:[#allocation4 + $0xf0] ss:$8 sps:$4 sm:$0xff]   ;;  %v3197_v29 = vld [vmem:[#allocation4 + $0x244] ss:$8 sps:$4 sm:$0xff]  }
  0xcf   : > { %1357 = vmatprep.mubr.bf16.mxu1 %v466_v10  ;;  %v347_v26 = vld [vmem:[%s3888_s9 + $0x110] sm:$0xff]  ;;  %v313_v28 = vld [vmem:[%s3888_s9] sm:$0xff]  ;;  %v338_v33 = vld [vmem:[%s3888_s9 + $0xc8] sm:$0xff] }
  0xd0   : > { %v355_v27 = vld [vmem:[%s3888_s9 + $0x150] sm:$0xff]  ;;  %v321_v31 = vld [vmem:[%s3888_s9 + $0x40] sm:$0xff]  ;;  %v372_v35 = vld [vmem:[%s3888_s9 + $0x1d8] sm:$0xff] }
  0xd1   : > { %1471 = vmatpush1.bf16.msra.mxu0 %v3125_v23  ;;  %1338 = vmatpush1.bf16.msra.mxu1 %v3173_v37  ;;  %v3219_v23 = vld [vmem:[#allocation4 + $0xf4] ss:$8 sps:$4 sm:$0xff]   ;;  %v483_v37 = vpack.c.bf16 %v355_v27, %v347_v26  ;;  %v370_v7 = vld [vmem:[%s3888_s9 + $0x1c8] sm:$0xff]  ;;  %v3958_v10 = vld [vmem:[#allocation4 + $0x330] ss:$8 sps:$4 sm:$0xff]  }
  0xd2   : > { %1472 = vmatprep.subr.bf16.mxu0 %v3126_v25  ;;  %1339 = vmatprep.subr.bf16.mxu1 %v3177_v39  ;;  %v3189_v25 = vld [vmem:[#allocation4 + $0x230] ss:$8 sps:$4 sm:$0xff]   ;;  %v3195_v39 = vld [vmem:[#allocation4 + $0x240] ss:$8 sps:$4 sm:$0xff]   ;;  %v3950_v3 = vld [vmem:[#allocation4 + $0x334] ss:$8 sps:$4 sm:$0xff]  }
  0xd3   : > { %v379_v63 = vld [vmem:[%s3888_s9 + $0x210] sm:$0xff]  ;;  %v3961_v12 = vld [vmem:[#allocation4 + $0x344] ss:$8 sps:$4 sm:$0xff]  }
  0xd4   : > { %v387_v0 = vld [vmem:[%s3888_s9 + $0x250] sm:$0xff]  ;;  %v369_v26 = vld [vmem:[%s3888_s9 + $0x1c0] sm:$0xff]  ;;  %v378_v27 = vld [vmem:[%s3888_s9 + $0x208] sm:$0xff] }
  0xd5   : > { %1473 = vmatpush1.bf16.msra.mxu0 %v3128_v30  ;;  %1340 = vmatpush1.bf16.msra.mxu1 %v3179_v41  ;;  %v364_v30 = vld [vmem:[%s3888_s9 + $0x198] sm:$0xff] }
  0xd6   : > { %1474 = vmatprep.subr.bf16.mxu0 %v3129_v32  ;;  %1341 = vmatprep.subr.bf16.mxu1 %v3180_v43  ;;  %v330_v32 = vld [vmem:[%s3888_s9 + $0x88] sm:$0xff]  ;;  %v3203_v41 = vld [vmem:[#allocation4 + $0x254] ss:$8 sps:$4 sm:$0xff]  }
  0xd7   : > { %v363_v43 = vld [vmem:[%s3888_s9 + $0x190] sm:$0xff] }
  0xd8   : > { %v3227_v17 = vld [vmem:[#allocation4 + $0x294] ss:$8 sps:$4 sm:$0xff]  }
  0xd9   : > { %1475 = vmatpush1.bf16.msra.mxu0 %v3131_v34  ;;  %1342 = vmatpush1.bf16.msra.mxu1 %v3185_v45  ;;  %v3921_v34 = vld [vmem:[#allocation4 + $0x304] ss:$8 sps:$4 sm:$0xff]   ;;  %v3201_v45 = vld [vmem:[#allocation4 + $0x250] ss:$8 sps:$4 sm:$0xff]  }
  0xda   : > { %1476 = vmatprep.subr.bf16.mxu0 %v3132_v36  ;;  %1343 = vmatprep.subr.bf16.mxu1 %v3186_v47  ;;  %v465_v36 = vpack.c.bf16 %v321_v31, %v313_v28  ;;  %v3211_v47 = vld [vmem:[#allocation4 + $0x264] ss:$8 sps:$4 sm:$0xff]  }
  0xdb   : > { %v386_v28 = vld [vmem:[%s3888_s9 + $0x248] sm:$0xff] }
  0xdd   : > { %1477 = vmatpush1.bf16.msra.mxu0 %v3134_v38  ;;  %1344 = vmatpush1.bf16.msra.mxu1 %v3188_v49  ;;  %v474_v38 = vpack.c.bf16 %v338_v33, %v330_v32  ;;  %v388_v49 = vld [vmem:[%s3888_s9 + $0x258] sm:$0xff]  ;;  %v3981_v32 = vld [vmem:[#allocation4 + $0x364] ss:$8 sps:$4 sm:$0xff]  }
  0xde   : > { %1478 = vmatprep.subr.bf16.mxu0 %v3138_v40  ;;  %1345 = vmatprep.subr.bf16.mxu1 %v3192_v51  ;;  %v492_v40 = vpack.c.bf16 %v372_v35, %v364_v30  ;;  %v337_v51 = vld [vmem:[%s3888_s9 + $0xc0] sm:$0xff]  ;;  %v3978_v30 = vld [vmem:[#allocation4 + $0x350] ss:$8 sps:$4 sm:$0xff]   ;;  %v498_v35 = vpack.c.bf16 %v386_v28, %v378_v27  ;;  %v4028_v27 = vld [vmem:[#allocation4 + $0x3b4] ss:$8 sps:$4 sm:$0xff]  }
  0xdf   : > { %v451_v28 = vld [vmem:[%s3888_s9 + $0x450] sm:$0xff] }
  0xe1   : > { %1479 = vmatpush1.bf16.msra.mxu0 %v3140_v42  ;;  %1346 = vmatpush1.bf16.msra.mxu1 %v3194_v53  ;;  %v3925_v42 = vld [vmem:[#allocation4 + $0x300] ss:$8 sps:$4 sm:$0xff]  }
  0xe2   : > { %1480 = vmatprep.subr.bf16.mxu0 %v3144_v44  ;;  %1347 = vmatprep.subr.bf16.mxu1 %v3198_v55  ;;  %v371_v44 = vld [vmem:[%s3888_s9 + $0x1d0] sm:$0xff]  ;;  %v354_v53 = vld [vmem:[%s3888_s9 + $0x148] sm:$0xff] }
  0xe5   : > { %1481 = vmatpush1.bf16.msra.mxu0 %v3146_v46  ;;  %1348 = vmatpush1.bf16.msra.mxu1 %v3200_v59  ;;  %v3929_v46 = vld [vmem:[#allocation4 + $0x314] ss:$8 sps:$4 sm:$0xff]   ;;  %v3209_v59 = vld [vmem:[#allocation4 + $0x260] ss:$8 sps:$4 sm:$0xff]  }
  0xe6   : > { %1482 = vmatprep.subr.bf16.mxu0 %v3150_v48  ;;  %1349 = vmatprep.subr.bf16.mxu1 %v3204_v61  ;;  %v380_v48 = vld [vmem:[%s3888_s9 + $0x218] sm:$0xff] }
  0xe7   : > { %v500_v60 = vpack.c.bf16 %v388_v49, %v380_v48  ;;  %v3218_v61 = vld [vmem:[#allocation4 + $0x274] ss:$8 sps:$4 sm:$0xff]   ;;  %v3231_v48 = vld [vmem:[#allocation4 + $0x2b0] ss:$8 sps:$4 sm:$0xff]   ;;  %v394_v49 = vld [vmem:[%s3888_s9 + $0x288] sm:$0xff] }
  0xe9   : > { %1483 = vmatpush1.bf16.msra.mxu0 %v3152_v50  ;;  %1350 = vmatpush1.bf16.msra.mxu1 %v3206_v2  ;;  %v329_v50 = vld [vmem:[%s3888_s9 + $0x80] sm:$0xff] }
  0xea   : > { %1484 = vmatprep.subr.bf16.mxu0 %v3156_v52  ;;  %1351 = vmatprep.subr.bf16.mxu1 %v3207_v8  ;;  %v346_v52 = vld [vmem:[%s3888_s9 + $0x108] sm:$0xff]  ;;  %v473_v55 = vpack.c.bf16 %v337_v51, %v329_v50  ;;  %v345_v2 = vld [vmem:[%s3888_s9 + $0x100] sm:$0xff]  ;;  %v404_v8 = vld [vmem:[%s3888_s9 + $0x2d8] sm:$0xff] }
  0xeb   : > { %v482_v58 = vpack.c.bf16 %v354_v53, %v346_v52  ;;  %v402_v50 = vld [vmem:[%s3888_s9 + $0x2c8] sm:$0xff]  ;;  %v436_v51 = vld [vmem:[%s3888_s9 + $0x3d8] sm:$0xff] }
  0xec   : > { %v3239_v52 = vld [vmem:[#allocation4 + $0x2c4] ss:$8 sps:$4 sm:$0xff]   ;;  %v3998_v53 = vld [vmem:[#allocation4 + $0x370] ss:$8 sps:$4 sm:$0xff]  }
  0xed   : > { %1485 = vmatpush1.bf16.msra.mxu0 %v3158_v54  ;;  %1352 = vmatpush1.bf16.msra.mxu1 %v3212_v13  ;;  %v3938_v54 = vld [vmem:[#allocation4 + $0x310] ss:$8 sps:$4 sm:$0xff]   ;;  %v499_v13 = vpack.c.bf16 %v387_v0, %v379_v63  ;;  %v3245_v63 = vld [vmem:[#allocation4 + $0x2d4] ss:$8 sps:$4 sm:$0xff]   ;;  %v4004_v0 = vld [vmem:[#allocation4 + $0x380] ss:$8 sps:$4 sm:$0xff]  }
  0xee   : > { %1486 = vmatprep.subr.bf16.mxu0 %v3162_v56  ;;  %1353 = vmatprep.subr.bf16.mxu1 %v3213_v16  ;;  %v3941_v56 = vld [vmem:[#allocation4 + $0x324] ss:$8 sps:$4 sm:$0xff]   ;;  %v3222_v16 = vld [vmem:[#allocation4 + $0x280] ss:$8 sps:$4 sm:$0xff]  }
  0xf1   : > { %1487 = vmatpush1.bf16.msra.mxu0 %v3164_v57  ;;  %1354 = vmatpush1.bf16.msra.mxu1 %v3215_v19  ;;  %v491_v57 = vpack.c.bf16 %v371_v44, %v363_v43  ;;  %v395_v19 = vld [vmem:[%s3888_s9 + $0x290] sm:$0xff]  ;;  %v377_v43 = vld [vmem:[%s3888_s9 + $0x200] sm:$0xff] }
  0xf2   : > { %1587 = vmatprep.subr.bf16.mxu0 %v3170_v62  ;;  %1355 = vmatprep.subr.bf16.mxu1 %v3219_v23  ;;  %v3944_v62 = vld [vmem:[#allocation4 + $0x320] ss:$8 sps:$4 sm:$0xff]   ;;  %v412_v23 = vld [vmem:[%s3888_s9 + $0x318] sm:$0xff] }
  0xf3   : > { %v3990_v44 = vld [vmem:[#allocation4 + $0x374] ss:$8 sps:$4 sm:$0xff]  }
  0xf4   : > { %1489 = vmatmul.mubr.bf16.vlgmr.msra.gmra.mrb[0].mxu0 %v467_v1  ;;  %v3216_v1 = vld [vmem:[#allocation4 + $0x270] ss:$8 sps:$4 sm:$0xff]  }
  0xf5   : > { %1588 = vmatpush1.bf16.msra.mxu0 %v3168_v4  ;;  %1498 = vmatprep.mubr.bf16.mxu0 %v476_v6  ;;  %v353_v4 = vld [vmem:[%s3888_s9 + $0x140] sm:$0xff]  ;;  %v362_v6 = vld [vmem:[%s3888_s9 + $0x188] sm:$0xff] }
  0xf6   : > { %1589 = vmatprep.subr.bf16.mxu0 %v3176_v5  ;;  %1356 = vmatpush1.bf16.msra.mxu1 %v3221_v24  ;;  %v396_v5 = vld [vmem:[%s3888_s9 + $0x298] sm:$0xff]  ;;  %v481_v11 = vpack.c.bf16 %v353_v4, %v345_v2  ;;  %v435_v2 = vld [vmem:[%s3888_s9 + $0x3d0] sm:$0xff] }
  0xf7   : > { %2768 = vmatprep.subr.bf16.mxu1 %v3921_v34  ;;  %v508_v15 = vpack.c.bf16 %v404_v8, %v396_v5  ;;  %v420_v24 = vld [vmem:[%s3888_s9 + $0x358] sm:$0xff]  ;;  %v3251_v8 = vld [vmem:[#allocation4 + $0x2e4] ss:$8 sps:$4 sm:$0xff]  }
  0xf8   : > { %v3243_v4 = vld [vmem:[#allocation4 + $0x2d0] ss:$8 sps:$4 sm:$0xff]   ;;  %v4009_v5 = vld [vmem:[#allocation4 + $0x394] ss:$8 sps:$4 sm:$0xff]  }
  0xf9   : > { %1590 = vmatpush1.bf16.msra.mxu0 %v3174_v9  ;;  %1358 = vmatmul.mubr.bf16.vlgmr.msra.gmra.mrb[0].mxu1 %v465_v36  ;;  %v3224_v9 = vld [vmem:[#allocation4 + $0x284] ss:$8 sps:$4 sm:$0xff]   ;;  %v516_v36 = vpack.c.bf16 %v420_v24, %v412_v23  ;;  %v3249_v23 = vld [vmem:[#allocation4 + $0x2e0] ss:$8 sps:$4 sm:$0xff]   ;;  %v3260_v24 = vld [vmem:[#allocation4 + $0x2f4] ss:$8 sps:$4 sm:$0xff]  }
  0xfa   : > { %1591 = vmatprep.subr.bf16.mxu0 %v3184_v14  ;;  %1367 = vmatprep.mubr.bf16.mxu1 %v474_v38  ;;  %v490_v14 = vpack.c.bf16 %v370_v7, %v362_v6  ;;  %v3233_v38 = vld [vmem:[#allocation4 + $0x2b4] ss:$8 sps:$4 sm:$0xff]  }
  0xfb   : > { %2784 = vmatpush1.bf16.msra.mxu1 %v3925_v42  ;;  %v444_v6 = vld [vmem:[%s3888_s9 + $0x418] sm:$0xff] }
  0xfc   : > { %1499 = vmatmul.mubr.bf16.gmra.mrb[4].mxu0 %v475_v18  ;;  %2769 = vmatprep.subr.bf16.mxu1 %v3929_v46  ;;  %v3964_v18 = vld [vmem:[#allocation4 + $0x340] ss:$8 sps:$4 sm:$0xff]   ;;  %v452_v7 = vld [vmem:[%s3888_s9 + $0x458] sm:$0xff] }
  0xfd   : > { %1592 = vmatpush1.bf16.msra.mxu0 %v3182_v20  ;;  %1508 = vmatprep.mubr.bf16.mxu0 %v484_v21  ;;  %v403_v20 = vld [vmem:[%s3888_s9 + $0x2d0] sm:$0xff] }
  0xfe   : > { %1593 = vmatprep.subr.bf16.mxu0 %v3191_v22  ;;  %v3225_v21 = vld [vmem:[#allocation4 + $0x290] ss:$8 sps:$4 sm:$0xff]   ;;  %v3969_v22 = vld [vmem:[#allocation4 + $0x354] ss:$8 sps:$4 sm:$0xff]   ;;  %v507_v33 = vpack.c.bf16 %v403_v20, %v395_v19 }
  0xff   : > { %2785 = vmatpush1.bf16.msra.mxu1 %v3938_v54 }
 0x100   : > { %2770 = vmatprep.subr.bf16.mxu1 %v3941_v56 }
 0x101   : > { %1594 = vmatpush1.bf16.msra.mxu0 %v3189_v25  ;;  %1368 = vmatmul.mubr.bf16.gmra.mrb[4].mxu1 %v473_v55  ;;  %v361_v25 = vld [vmem:[%s3888_s9 + $0x180] sm:$0xff] }
 0x102   : > { %1595 = vmatprep.subr.bf16.mxu0 %v3197_v29  ;;  %1377 = vmatprep.mubr.bf16.mxu1 %v482_v58  ;;  %v3230_v29 = vld [vmem:[#allocation4 + $0x2a4] ss:$8 sps:$4 sm:$0xff]   ;;  %v489_v31 = vpack.c.bf16 %v369_v26, %v361_v25  ;;  %v4024_v25 = vld [vmem:[#allocation4 + $0x3a0] ss:$8 sps:$4 sm:$0xff]   ;;  %v443_v26 = vld [vmem:[%s3888_s9 + $0x410] sm:$0xff] }
 0x103   : > { %2786 = vmatpush1.bf16.msra.mxu1 %v3944_v62 }
 0x104   : > { %1509 = vmatmul.mubr.bf16.gmra.mrb[8].mxu0 %v483_v37  ;;  %2771 = vmatprep.subr.bf16.mxu1 %v3950_v3  ;;  %v3228_v37 = vld [vmem:[#allocation4 + $0x2a0] ss:$8 sps:$4 sm:$0xff]  }
 0x105   : > { %1596 = vmatpush1.bf16.msra.mxu0 %v3195_v39  ;;  %1518 = vmatprep.mubr.bf16.mxu0 %v492_v40  ;;  %v3984_v39 = vld [vmem:[#allocation4 + $0x360] ss:$8 sps:$4 sm:$0xff]   ;;  %v411_v40 = vld [vmem:[%s3888_s9 + $0x310] sm:$0xff] }
 0x106   : > { %1597 = vmatprep.subr.bf16.mxu0 %v3203_v41  ;;  %v419_v41 = vld [vmem:[%s3888_s9 + $0x350] sm:$0xff] }
 0x107   : > { %2787 = vmatpush1.bf16.msra.mxu1 %v3958_v10  ;;  %v515_v58 = vpack.c.bf16 %v419_v41, %v411_v40  ;;  %v4040_v41 = vld [vmem:[#allocation4 + $0x3c4] ss:$8 sps:$4 sm:$0xff]  }
 0x108   : > { %2772 = vmatprep.subr.bf16.mxu1 %v3961_v12 }
 0x109   : > { %1598 = vmatpush1.bf16.msra.mxu0 %v3201_v45  ;;  %1378 = vmatmul.mubr.bf16.gmra.mrb[8].mxu1 %v481_v11  ;;  %v428_v45 = vld [vmem:[%s3888_s9 + $0x398] sm:$0xff]  ;;  %v401_v11 = vld [vmem:[%s3888_s9 + $0x2c0] sm:$0xff] }
 0x10a   : > { %1599 = vmatprep.subr.bf16.mxu0 %v3211_v47  ;;  %1387 = vmatprep.mubr.bf16.mxu1 %v490_v14  ;;  %v385_v47 = vld [vmem:[%s3888_s9 + $0x240] sm:$0xff]  ;;  %v418_v14 = vld [vmem:[%s3888_s9 + $0x348] sm:$0xff] }
 0x10b   : > { %2788 = vmatpush1.bf16.msra.mxu1 %v3964_v18  ;;  %v497_v55 = vpack.c.bf16 %v385_v47, %v377_v43  ;;  %v531_v43 = vpack.c.bf16 %v451_v28, %v443_v26  ;;  %v457_v28 = vld [vmem:[%s3888_s9 + $0x480] sm:$0xff] }
 0x10c   : > { %1519 = vmatmul.mubr.bf16.gmra.mrb[12].mxu0 %v491_v57  ;;  %2773 = vmatprep.subr.bf16.mxu1 %v3969_v22  ;;  %v4001_v57 = vld [vmem:[#allocation4 + $0x384] ss:$8 sps:$4 sm:$0xff]  }
 0x10d   : > { %1528 = vmatprep.mubr.bf16.mxu0 %v500_v60  ;;  %1600 = vmatpush1.bf16.msra.mxu0 %v3209_v59  ;;  %v506_v59 = vpack.c.bf16 %v402_v50, %v394_v49  ;;  %v524_v60 = vpack.c.bf16 %v436_v51, %v428_v45  ;;  %v4047_v49 = vld [vmem:[#allocation4 + $0x3d4] ss:$8 sps:$4 sm:$0xff]   ;;  %v425_v50 = vld [vmem:[%s3888_s9 + $0x380] sm:$0xff] }
 0x10e   : > { %1601 = vmatprep.subr.bf16.mxu0 %v3218_v61  ;;  %v3237_v61 = vld [vmem:[#allocation4 + $0x2c0] ss:$8 sps:$4 sm:$0xff]  }
 0x10f   : > { %2789 = vmatpush1.bf16.msra.mxu1 %v3978_v30  ;;  %v433_v51 = vld [vmem:[%s3888_s9 + $0x3c0] sm:$0xff] }
 0x110   : > { %2774 = vmatprep.subr.bf16.mxu1 %v3981_v32 }
 0x111   : > { %1602 = vmatpush1.bf16.msra.mxu0 %v3216_v1  ;;  %1388 = vmatmul.mubr.bf16.gmra.mrb[12].mxu1 %v489_v31  ;;  %v427_v1 = vld [vmem:[%s3888_s9 + $0x390] sm:$0xff]  ;;  %v417_v31 = vld [vmem:[%s3888_s9 + $0x340] sm:$0xff] }
 0x112   : > { %1603 = vmatprep.subr.bf16.mxu0 %v3224_v9  ;;  %1397 = vmatprep.mubr.bf16.mxu1 %v498_v35  ;;  %v393_v9 = vld [vmem:[%s3888_s9 + $0x280] sm:$0xff]  ;;  %v523_v19 = vpack.c.bf16 %v435_v2, %v427_v1  ;;  %v426_v35 = vld [vmem:[%s3888_s9 + $0x388] sm:$0xff] }
 0x113   : > { %2790 = vmatpush1.bf16.msra.mxu1 %v3984_v39 }
 0x114   : > { %1529 = vmatmul.mubr.bf16.gmra.mrb[16].mxu0 %v499_v13  ;;  %2775 = vmatprep.subr.bf16.mxu1 %v3990_v44  ;;  %v410_v13 = vld [vmem:[%s3888_s9 + $0x308] sm:$0xff] }
 0x115   : > { %1538 = vmatprep.mubr.bf16.mxu0 %v508_v15  ;;  %1604 = vmatpush1.bf16.msra.mxu0 %v3222_v16  ;;  %v4018_v15 = vld [vmem:[#allocation4 + $0x390] ss:$8 sps:$4 sm:$0xff]   ;;  %v505_v16 = vpack.c.bf16 %v401_v11, %v393_v9  ;;  %v514_v20 = vpack.c.bf16 %v418_v14, %v410_v13  ;;  %v4067_v9 = vld [vmem:[#allocation4 + $0x3f4] ss:$8 sps:$4 sm:$0xff]   ;;  %v317_v11 = vld [vmem:[%s3888_s9 + $0x20] sm:$0xff] }
 0x116   : > { %1605 = vmatprep.subr.bf16.mxu0 %v3227_v17  ;;  %v4021_v17 = vld [vmem:[#allocation4 + $0x3a4] ss:$8 sps:$4 sm:$0xff]  }
 0x117   : > { %2791 = vmatpush1.bf16.msra.mxu1 %v3998_v53  ;;  %v325_v13 = vld [vmem:[%s3888_s9 + $0x60] sm:$0xff]  ;;  %v458_v14 = vld [vmem:[%s3888_s9 + $0x488] sm:$0xff] }
 0x118   : > { %2776 = vmatprep.subr.bf16.mxu1 %v4001_v57 }
 0x119   : > { %1606 = vmatpush1.bf16.msra.mxu0 %v3225_v21  ;;  %1398 = vmatmul.mubr.bf16.gmra.mrb[16].mxu1 %v497_v55  ;;  %v532_v21 = vpack.c.bf16 %v452_v7, %v444_v6  ;;  %v442_v55 = vld [vmem:[%s3888_s9 + $0x408] sm:$0xff]  ;;  %v441_v7 = vld [vmem:[%s3888_s9 + $0x400] sm:$0xff] }
 0x11a   : > { %1607 = vmatprep.subr.bf16.mxu0 %v3230_v29  ;;  %1407 = vmatprep.mubr.bf16.mxu1 %v506_v59  ;;  %v409_v29 = vld [vmem:[%s3888_s9 + $0x300] sm:$0xff]  ;;  %v326_v59 = vld [vmem:[%s3888_s9 + $0x68] sm:$0xff] }
 0x11b   : > { %2792 = vmatpush1.bf16.msra.mxu1 %v4004_v0  ;;  %v513_v40 = vpack.c.bf16 %v417_v31, %v409_v29  ;;  %v4062_v6 = vld [vmem:[#allocation4 + $0x3e0] ss:$8 sps:$4 sm:$0xff]  }
 0x11c   : > { %1539 = vmatmul.mubr.bf16.gmra.mrb[20].mxu0 %v507_v33  ;;  %2777 = vmatprep.subr.bf16.mxu1 %v4009_v5  ;;  %v3258_v33 = vld [vmem:[#allocation4 + $0x2f0] ss:$8 sps:$4 sm:$0xff]   ;;  %v333_v29 = vld [vmem:[%s3888_s9 + $0xa0] sm:$0xff] }
 0x11d   : > { %1548 = vmatprep.mubr.bf16.mxu0 %v516_v36  ;;  %1608 = vmatpush1.bf16.msra.mxu0 %v3228_v37  ;;  %v434_v36 = vld [vmem:[%s3888_s9 + $0x3c8] sm:$0xff]  ;;  %v460_v37 = vld [vmem:[%s3888_s9 + $0x498] sm:$0xff]  ;;  %v341_v31 = vld [vmem:[%s3888_s9 + $0xe0] sm:$0xff] }
 0x11e   : > { %1609 = vmatprep.subr.bf16.mxu0 %v3233_v38  ;;  %v4037_v38 = vld [vmem:[#allocation4 + $0x3b0] ss:$8 sps:$4 sm:$0xff]   ;;  %v522_v45 = vpack.c.bf16 %v434_v36, %v426_v35  ;;  %v540_v47 = vpack.c.bf16 %v460_v37, %v460_v37  ;;  %v350_v36 = vld [vmem:[%s3888_s9 + $0x128] sm:$0xff] }
 0x11f   : > { %2793 = vmatpush1.bf16.msra.mxu1 %v4018_v15  ;;  %v408_v35 = vld [vmem:[%s3888_s9 + $0x2f8] sm:$0xff]  ;;  %v358_v37 = vld [vmem:[%s3888_s9 + $0x168] sm:$0xff] }
 0x120   : > { %2778 = vmatprep.subr.bf16.mxu1 %v4021_v17 }
 0x121   : > { %1610 = vmatpush1.bf16.msra.mxu0 %v3231_v48  ;;  %1408 = vmatmul.mubr.bf16.gmra.mrb[20].mxu1 %v505_v16  ;;  %v4044_v48 = vld [vmem:[#allocation4 + $0x3c0] ss:$8 sps:$4 sm:$0xff]  }
 0x122   : > { %1611 = vmatprep.subr.bf16.mxu0 %v3239_v52  ;;  %1417 = vmatprep.mubr.bf16.mxu1 %v514_v20  ;;  %v459_v52 = vld [vmem:[%s3888_s9 + $0x490] sm:$0xff]  ;;  %v334_v16 = vld [vmem:[%s3888_s9 + $0xa8] sm:$0xff] }
 0x123   : > { %2794 = vmatpush1.bf16.msra.mxu1 %v4024_v25  ;;  %v539_v1 = vpack.c.bf16 %v459_v52, %v459_v52  ;;  %v4075_v20 = vld [vmem:[#allocation4 + $0x3f0] ss:$8 sps:$4 sm:$0xff]  }
 0x124   : > { %1549 = vmatmul.mubr.bf16.gmra.mrb[24].mxu0 %v515_v58  ;;  %2779 = vmatprep.subr.bf16.mxu1 %v4028_v27  ;;  %v450_v58 = vld [vmem:[%s3888_s9 + $0x448] sm:$0xff]  ;;  %v416_v52 = vld [vmem:[%s3888_s9 + $0x338] sm:$0xff] }
 0x125   : > { %1558 = vmatprep.mubr.bf16.mxu0 %v524_v60  ;;  %1612 = vmatpush1.bf16.msra.mxu0 %v3237_v61  ;;  %v4057_v60 = vld [vmem:[#allocation4 + $0x3d0] ss:$8 sps:$4 sm:$0xff]   ;;  %v521_v61 = vpack.c.bf16 %v433_v51, %v425_v50  ;;  %v530_v2 = vpack.c.bf16 %v450_v58, %v442_v55  ;;  %v357_v51 = vld [vmem:[%s3888_s9 + $0x160] sm:$0xff] }
 0x126   : > { %1613 = vmatprep.subr.bf16.mxu0 %v3245_v63  ;;  %v4060_v63 = vld [vmem:[#allocation4 + $0x3e4] ss:$8 sps:$4 sm:$0xff]   ;;  %v407_v50 = vld [vmem:[%s3888_s9 + $0x2f0] sm:$0xff]  ;;  %v424_v55 = vld [vmem:[%s3888_s9 + $0x378] sm:$0xff] }
 0x127   : > { %2795 = vmatpush1.bf16.msra.mxu1 %v4037_v38 }
 0x128   : > { %2780 = vmatprep.subr.bf16.mxu1 %v4040_v41 }
 0x129   : > { %1614 = vmatpush1.bf16.msra.mxu0 %v3243_v4  ;;  %1418 = vmatmul.mubr.bf16.gmra.mrb[24].mxu1 %v513_v40  ;;  %v537_v40 = vpack.c.bf16 %v457_v28, %v457_v28 }
 0x12a   : > { %1615 = vmatprep.subr.bf16.mxu0 %v3251_v8  ;;  %1427 = vmatprep.mubr.bf16.mxu1 %v522_v45  ;;  %v449_v8 = vld [vmem:[%s3888_s9 + $0x440] sm:$0xff] }
 0x12b   : > { %2796 = vmatpush1.bf16.msra.mxu1 %v4044_v48 }
 0x12c   : > { %1559 = vmatmul.mubr.bf16.gmra.mrb[28].mxu0 %v523_v19  ;;  %2781 = vmatprep.subr.bf16.mxu1 %v4047_v49  ;;  %v342_v19 = vld [vmem:[%s3888_s9 + $0xe8] sm:$0xff] }
 0x12d   : > { %1568 = vmatprep.mubr.bf16.mxu0 %v532_v21  ;;  %1616 = vmatpush1.bf16.msra.mxu0 %v3249_v23  ;;  %v529_v21 = vpack.c.bf16 %v449_v8, %v441_v7  ;;  %v469_v23 = vpack.c.bf16 %v325_v13, %v317_v11  ;;  %v478_v26 = vpack.c.bf16 %v342_v19, %v334_v16  ;;  %v440_v7 = vld [vmem:[%s3888_s9 + $0x3f8] sm:$0xff]  ;;  %v439_v16 = vld [vmem:[%s3888_s9 + $0x3f0] sm:$0xff]  ;;  %v389_v19 = vld [vmem:[%s3888_s9 + $0x260] sm:$0xff] }
 0x12e   : > { %1617 = vmatprep.subr.bf16.mxu0 %v3260_v24  ;;  %v538_v24 = vpack.c.bf16 %v458_v14, %v458_v14  ;;  %v381_v14 = vld [vmem:[%s3888_s9 + $0x220] sm:$0xff] }
 0x12f   : > { %2797 = vmatpush1.bf16.msra.mxu1 %v4057_v60 }
 0x130   : > { %2782 = vmatprep.subr.bf16.mxu1 %v4060_v63 }
 0x131   : > { %1618 = vmatpush1.bf16.msra.mxu0 %v3258_v33  ;;  %1428 = vmatmul.mubr.bf16.gmra.mrb[28].mxu1 %v521_v61  ;;  %v400_v33 = vld [vmem:[%s3888_s9 + $0x2b8] sm:$0xff]  ;;  %v365_v61 = vld [vmem:[%s3888_s9 + $0x1a0] sm:$0xff] }
 0x132   : > { %1718 = vmatprep.subr.bf16.mxu0 %v3921_v34  ;;  %v318_v34 = vld [vmem:[%s3888_s9 + $0x28] sm:$0xff]  ;;  %1437 = vmatprep.mubr.bf16.mxu1 %v530_v2  ;;  %v512_v45 = vpack.c.bf16 %v408_v35, %v400_v33  ;;  %v373_v2 = vld [vmem:[%s3888_s9 + $0x1e0] sm:$0xff]  ;;  %v464_v35 = vld [vmem:[%s3888_s9 + $0x4b8] sm:$0xff] }
 0x133   : > { %v470_v4 = vpack.c.bf16 %v326_v59, %v318_v34  ;;  %2798 = vmatpush1.bf16.msra.mxu1 %v4062_v6  ;;  %v520_v59 = vpack.c.bf16 %v424_v55, %v416_v52  ;;  %v493_v11 = vpack.c.bf16 %v373_v2, %v365_v61  ;;  %v405_v33 = vld [vmem:[%s3888_s9 + $0x2e0] sm:$0xff]  ;;  %v454_v52 = vld [vmem:[%s3888_s9 + $0x468] sm:$0xff]  ;;  %v352_v2 = vld [vmem:[%s3888_s9 + $0x138] sm:$0xff] }
 0x134   : > { %1569 = vmatmul.mubr.bf16.gmra.mrb[32].mxu0 %v531_v43  ;;  %2783 = vmatprep.subr.bf16.mxu1 %v4067_v9  ;;  %v477_v43 = vpack.c.bf16 %v341_v31, %v333_v29  ;;  %v447_v29 = vld [vmem:[%s3888_s9 + $0x430] sm:$0xff] }
 0x135   : > { %1578 = vmatprep.mubr.bf16.mxu0 %v540_v47  ;;  %v349_v47 = vld [vmem:[%s3888_s9 + $0x120] sm:$0xff]  ;;  %v455_v31 = vld [vmem:[%s3888_s9 + $0x470] sm:$0xff] }
 0x136   : > { %v485_v34 = vpack.c.bf16 %v357_v51, %v349_v47  ;;  %v438_v47 = vld [vmem:[%s3888_s9 + $0x3e8] sm:$0xff] }
 0x137   : > { %2799 = vmatpush1.bf16.msra.mxu1 %v4075_v20  ;;  %v446_v51 = vld [vmem:[%s3888_s9 + $0x428] sm:$0xff] }
 0x138   : > { %v534_v55 = vpack.c.bf16 %v454_v52, %v446_v51  ;;  %v3305_v52 = vld [vmem:[#allocation7 + $0x28] sm:$0xff]  }
 0x139   : > { %1438 = vmatmul.mubr.bf16.gmra.mrb[32].mxu1 %v529_v21  ;;  %v448_v21 = vld [vmem:[%s3888_s9 + $0x438] sm:$0xff] }
 0x13a   : > { %1447 = vmatprep.mubr.bf16.mxu1 %v538_v24 }
 0x13c   : > { %1579 = vmatmul.mubr.bf16.gmra.mrb[36].mxu0 %v539_v1  ;;  %v423_v1 = vld [vmem:[%s3888_s9 + $0x370] sm:$0xff] }
 0x13d   : > { %1619 = vmatprep.mubr.bf16.mxu0 %v470_v4  ;;  %v432_v4 = vld [vmem:[%s3888_s9 + $0x3b8] sm:$0xff] }
 0x13e   : > { %v528_v13 = vpack.c.bf16 %v440_v7, %v432_v4  ;;  %v360_v4 = vld [vmem:[%s3888_s9 + $0x178] sm:$0xff] }
 0x141   : > { %1448 = vmatmul.mubr.bf16.gmra.mrb[36].mxu1 %v537_v40  ;;  %v544_v40 = vpack.c.bf16 %v464_v35, %v464_v35  ;;  %v3296_v35 = vld [vmem:[#allocation7 + $0x48] sm:$0xff]  }
 0x142   : > { %1800 = vmatprep.mubr.bf16.mxu1 %v512_v45  ;;  %v421_v45 = vld [vmem:[%s3888_s9 + $0x360] sm:$0xff] }
 0x144   : > { %1620 = vmatmul.mubr.bf16.vlgmr.msra.gmra.mrb[0].mxu0 %v469_v23  ;;  %v456_v23 = vld [vmem:[%s3888_s9 + $0x478] sm:$0xff] }
 0x145   : > { %1719 = vmatpush1.bf16.msra.mxu0 %v3925_v42  ;;  %1629 = vmatprep.mubr.bf16.mxu0 %v478_v26  ;;  %v486_v42 = vpack.c.bf16 %v358_v37, %v350_v36  ;;  %v501_v26 = vpack.c.bf16 %v389_v19, %v381_v14  ;;  %v536_v28 = vpack.c.bf16 %v456_v23, %v448_v21  ;;  %v422_v36 = vld [vmem:[%s3888_s9 + $0x368] sm:$0xff]  ;;  %v384_v19 = vld [vmem:[%s3888_s9 + $0x238] sm:$0xff] }
 0x146   : > { %1720 = vmatprep.subr.bf16.mxu0 %v3929_v46  ;;  %v399_v46 = vld [vmem:[%s3888_s9 + $0x2b0] sm:$0xff]  ;;  %v392_v21 = vld [vmem:[%s3888_s9 + $0x278] sm:$0xff] }
 0x147   : > { %v511_v58 = vpack.c.bf16 %v407_v50, %v399_v46  ;;  %v429_v50 = vld [vmem:[%s3888_s9 + $0x3a0] sm:$0xff] }
 0x149   : > { %1721 = vmatpush1.bf16.msra.mxu0 %v3938_v54  ;;  %v366_v54 = vld [vmem:[%s3888_s9 + $0x1a8] sm:$0xff]  ;;  %1801 = vmatmul.mubr.bf16.vlgmr.msra.gmra.mrb[40].mxu1 %v511_v58 }
 0x14a   : > { %1722 = vmatprep.subr.bf16.mxu0 %v3941_v56  ;;  %v374_v56 = vld [vmem:[%s3888_s9 + $0x1e8] sm:$0xff]  ;;  %1810 = vmatprep.mubr.bf16.mxu1 %v520_v59  ;;  %v336_v59 = vld [vmem:[%s3888_s9 + $0xb8] sm:$0xff] }
 0x14c   : > { %1630 = vmatmul.mubr.bf16.gmra.mrb[4].mxu0 %v477_v43 }
 0x14d   : > { %1723 = vmatpush1.bf16.msra.mxu0 %v3944_v62  ;;  %1639 = vmatprep.mubr.bf16.mxu0 %v486_v42  ;;  %v494_v62 = vpack.c.bf16 %v374_v56, %v366_v54  ;;  %v430_v42 = vld [vmem:[%s3888_s9 + $0x3a8] sm:$0xff]  ;;  %v328_v56 = vld [vmem:[%s3888_s9 + $0x78] sm:$0xff] }
 0x14e   : > { %1724 = vmatprep.subr.bf16.mxu0 %v3950_v3  ;;  %v415_v3 = vld [vmem:[%s3888_s9 + $0x330] sm:$0xff] }
 0x14f   : > { %v519_v8 = vpack.c.bf16 %v423_v1, %v415_v3  ;;  %v335_v3 = vld [vmem:[%s3888_s9 + $0xb0] sm:$0xff] }
 0x150   : > { %v343_v1 = vld [vmem:[%s3888_s9 + $0xf0] sm:$0xff] }
 0x151   : > { %1725 = vmatpush1.bf16.msra.mxu0 %v3958_v10  ;;  %v382_v10 = vld [vmem:[%s3888_s9 + $0x228] sm:$0xff]  ;;  %1811 = vmatmul.mubr.bf16.gmra.mrb[44].mxu1 %v519_v8  ;;  %v479_v7 = vpack.c.bf16 %v343_v1, %v335_v3  ;;  %v359_v8 = vld [vmem:[%s3888_s9 + $0x170] sm:$0xff] }
 0x152   : > { %1726 = vmatprep.subr.bf16.mxu0 %v3961_v12  ;;  %v390_v12 = vld [vmem:[%s3888_s9 + $0x268] sm:$0xff]  ;;  %1820 = vmatprep.mubr.bf16.mxu1 %v528_v13  ;;  %v376_v13 = vld [vmem:[%s3888_s9 + $0x1f8] sm:$0xff] }
 0x154   : > { %1640 = vmatmul.mubr.bf16.gmra.mrb[8].mxu0 %v485_v34  ;;  %v319_v34 = vld [vmem:[%s3888_s9 + $0x30] sm:$0xff] }
 0x155   : > { %1727 = vmatpush1.bf16.msra.mxu0 %v3964_v18  ;;  %1649 = vmatprep.mubr.bf16.mxu0 %v494_v62  ;;  %v502_v18 = vpack.c.bf16 %v390_v12, %v382_v10  ;;  %v488_v10 = vpack.c.bf16 %v360_v4, %v352_v2  ;;  %v351_v12 = vld [vmem:[%s3888_s9 + $0x130] sm:$0xff] }
 0x156   : > { %1728 = vmatprep.subr.bf16.mxu0 %v3969_v22  ;;  %v431_v22 = vld [vmem:[%s3888_s9 + $0x3b0] sm:$0xff] }
 0x157   : > { %v527_v24 = vpack.c.bf16 %v439_v16, %v431_v22  ;;  %v367_v22 = vld [vmem:[%s3888_s9 + $0x1b0] sm:$0xff] }
 0x158   : > { %v375_v16 = vld [vmem:[%s3888_s9 + $0x1f0] sm:$0xff] }
 0x159   : > { %1729 = vmatpush1.bf16.msra.mxu0 %v3978_v30  ;;  %v398_v30 = vld [vmem:[%s3888_s9 + $0x2a8] sm:$0xff]  ;;  %1821 = vmatmul.mubr.bf16.gmra.mrb[48].mxu1 %v527_v24  ;;  %v495_v23 = vpack.c.bf16 %v375_v16, %v367_v22  ;;  %v391_v24 = vld [vmem:[%s3888_s9 + $0x270] sm:$0xff]  ;;  %v673_v22 = vld [vmem:[#allocation6] sm:$0x3] }
 0x15a   : > { %1730 = vmatprep.subr.bf16.mxu0 %v3981_v32  ;;  %v406_v32 = vld [vmem:[%s3888_s9 + $0x2e8] sm:$0xff]  ;;  %1830 = vmatprep.mubr.bf16.mxu1 %v536_v28 }
 0x15c   : > { %1650 = vmatmul.mubr.bf16.gmra.mrb[12].mxu0 %v493_v11  ;;  %v368_v11 = vld [vmem:[%s3888_s9 + $0x1b8] sm:$0xff] }
 0x15d   : > { %1659 = vmatprep.mubr.bf16.mxu0 %v502_v18  ;;  %1731 = vmatpush1.bf16.msra.mxu0 %v3984_v39  ;;  %v510_v39 = vpack.c.bf16 %v406_v32, %v398_v30  ;;  %v487_v18 = vpack.c.bf16 %v359_v8, %v351_v12  ;;  %v496_v14 = vpack.c.bf16 %v376_v13, %v368_v11  ;;  %v383_v32 = vld [vmem:[%s3888_s9 + $0x230] sm:$0xff] }
 0x15e   : > { %1732 = vmatprep.subr.bf16.mxu0 %v3990_v44  ;;  %v397_v44 = vld [vmem:[%s3888_s9 + $0x2a0] sm:$0xff]  ;;  %v504_v30 = vpack.c.bf16 %v392_v21, %v384_v19 }
 0x15f   : > { %v509_v37 = vpack.c.bf16 %v405_v33, %v397_v44 }
 0x161   : > { %1733 = vmatpush1.bf16.msra.mxu0 %v3998_v53  ;;  %v414_v53 = vld [vmem:[%s3888_s9 + $0x328] sm:$0xff] }
 0x162   : > { %1734 = vmatprep.subr.bf16.mxu0 %v4001_v57  ;;  %v535_v57 = vpack.c.bf16 %v455_v31, %v447_v29  ;;  %v518_v43 = vpack.c.bf16 %v422_v36, %v414_v53  ;;  %v3295_v31 = vld [vmem:[#allocation7] sm:$0xff]   ;;  %v3297_v53 = vld [vmem:[#allocation7 + $0x8] sm:$0xff]  }
 0x164   : > { %1660 = vmatmul.mubr.bf16.gmra.mrb[16].mxu0 %v501_v26  ;;  %1831 = vmatmul.mubr.bf16.gmra.mrb[52].mxu1 %v535_v57  ;;  %v503_v26 = vpack.c.bf16 %v391_v24, %v383_v32 }
 0x165   : > { %1669 = vmatprep.mubr.bf16.mxu0 %v510_v39  ;;  %1735 = vmatpush1.bf16.msra.mxu0 %v4004_v0  ;;  %v463_v0 = vld [vmem:[%s3888_s9 + $0x4b0] sm:$0xff]  ;;  %v3294_v39 = vld [vmem:[#allocation7 + $0x40] sm:$0xff]  }
 0x166   : > { %1736 = vmatprep.subr.bf16.mxu0 %v4009_v5  ;;  %1840 = vmatprep.mubr.bf16.mxu1 %v544_v40  ;;  %v413_v5 = vld [vmem:[%s3888_s9 + $0x320] sm:$0xff]  ;;  %v3299_v40 = vld [vmem:[#allocation7 + $0x10] sm:$0xff]  }
 0x167   : > { %v517_v46 = vpack.c.bf16 %v421_v45, %v413_v5  ;;  %2692 = vmatprep.subr.bf16.mxu1 %v3294_v39  ;;  %v3300_v5 = vld [vmem:[#allocation7 + $0x58] sm:$0xff]  }
 0x168   : > { %2693 = vmatpush3.bf16.msra.mxu1 %v3295_v31 }
 0x169   : > { %1737 = vmatpush1.bf16.msra.mxu0 %v4018_v15  ;;  %v543_v15 = vpack.c.bf16 %v463_v0, %v463_v0  ;;  %2694 = vmatprep.subr.bf16.mxu1 %v3296_v35 }
 0x16a   : > { %1738 = vmatprep.subr.bf16.mxu0 %v4021_v17  ;;  %v526_v17 = vpack.c.bf16 %v438_v47, %v430_v42  ;;  %v3301_v42 = vld [vmem:[#allocation7 + $0x18] sm:$0xff]  }
 0x16c   : > { %1670 = vmatmul.mubr.bf16.gmra.mrb[20].mxu0 %v509_v37  ;;  %1841 = vmatmul.mubr.bf16.gmra.mrb[56].mxu1 %v543_v15  ;;  %v3298_v37 = vld [vmem:[#allocation7 + $0x50] sm:$0xff]  }
 0x16d   : > { %1679 = vmatprep.mubr.bf16.mxu0 %v518_v43  ;;  %1739 = vmatpush1.bf16.msra.mxu0 %v4024_v25  ;;  %v437_v25 = vld [vmem:[%s3888_s9 + $0x3e0] sm:$0xff] }
 0x16e   : > { %1740 = vmatprep.subr.bf16.mxu0 %v4028_v27  ;;  %v525_v27 = vpack.c.bf16 %v437_v25, %v429_v50  ;;  %2695 = vmatpush3.bf16.msra.mxu1 %v3297_v53  ;;  %v3303_v50 = vld [vmem:[#allocation7 + $0x20] sm:$0xff]   ;;  %v3304_v25 = vld [vmem:[#allocation7 + $0x68] sm:$0xff]  }
 0x16f   : > { %2696 = vmatprep.subr.bf16.mxu1 %v3298_v37 }
 0x171   : > { %1741 = vmatpush1.bf16.msra.mxu0 %v4037_v38  ;;  %v445_v38 = vld [vmem:[%s3888_s9 + $0x420] sm:$0xff] }
 0x172   : > { %1742 = vmatprep.subr.bf16.mxu0 %v4040_v41  ;;  %v453_v41 = vld [vmem:[%s3888_s9 + $0x460] sm:$0xff]  ;;  %2697 = vmatpush3.bf16.msra.mxu1 %v3299_v40 }
 0x173   : > { %2698 = vmatprep.subr.bf16.mxu1 %v3300_v5 }
 0x174   : > { %1680 = vmatmul.mubr.bf16.gmra.mrb[24].mxu0 %v517_v46 }
 0x175   : > { %1689 = vmatprep.mubr.bf16.mxu0 %v526_v17  ;;  %1743 = vmatpush1.bf16.msra.mxu0 %v4044_v48  ;;  %v462_v48 = vld [vmem:[%s3888_s9 + $0x4a8] sm:$0xff] }
 0x176   : > { %1744 = vmatprep.subr.bf16.mxu0 %v4047_v49  ;;  %v533_v49 = vpack.c.bf16 %v453_v41, %v445_v38  ;;  %v542_v54 = vpack.c.bf16 %v462_v48, %v462_v48  ;;  %2699 = vmatpush3.bf16.msra.mxu1 %v3301_v42  ;;  %v3302_v17 = vld [vmem:[#allocation7 + $0x60] sm:$0xff]   ;;  %v3306_v41 = vld [vmem:[#allocation7 + $0x70] sm:$0xff]  }
 0x177   : > { %2700 = vmatprep.subr.bf16.mxu1 %v3302_v17  ;;  %v3307_v48 = vld [vmem:[#allocation7 + $0x30] sm:$0xff]  }
 0x179   : > { %1745 = vmatpush1.bf16.msra.mxu0 %v4057_v60  ;;  %v461_v60 = vld [vmem:[%s3888_s9 + $0x4a0] sm:$0xff] }
 0x17a   : > { %1746 = vmatprep.subr.bf16.mxu0 %v4060_v63  ;;  %v320_v63 = vld [vmem:[%s3888_s9 + $0x38] sm:$0xff]  ;;  %2701 = vmatpush3.bf16.msra.mxu1 %v3303_v50 }
 0x17b   : > { %v472_v58 = vpack.c.bf16 %v328_v56, %v320_v63  ;;  %2702 = vmatprep.subr.bf16.mxu1 %v3304_v25 }
 0x17c   : > { %1690 = vmatmul.mubr.bf16.gmra.mrb[28].mxu0 %v525_v27 }
 0x17d   : > { %1699 = vmatprep.mubr.bf16.mxu0 %v534_v55  ;;  %1747 = vmatpush1.bf16.msra.mxu0 %v4062_v6  ;;  %v541_v6 = vpack.c.bf16 %v461_v60, %v461_v60  ;;  %v3309_v60 = vld [vmem:[#allocation7 + $0x38] sm:$0xff]  }
 0x17e   : > { %1748 = vmatprep.subr.bf16.mxu0 %v4067_v9  ;;  %v327_v9 = vld [vmem:[%s3888_s9 + $0x70] sm:$0xff]  ;;  %2703 = vmatpush3.bf16.msra.mxu1 %v3305_v52 }
 0x17f   : > { %v471_v62 = vpack.c.bf16 %v327_v9, %v319_v34  ;;  %2704 = vmatprep.subr.bf16.mxu1 %v3306_v41 }
 0x181   : > { %1749 = vmatpush1.bf16.msra.mxu0 %v4075_v20  ;;  %v344_v20 = vld [vmem:[%s3888_s9 + $0xf8] sm:$0xff] }
 0x182   : > { %v480_v61 = vpack.c.bf16 %v344_v20, %v336_v59  ;;  %2705 = vmatpush3.bf16.msra.mxu1 %v3307_v48 }
 0x184   : > { %1700 = vmatmul.mubr.bf16.gmra.mrb[32].mxu0 %v533_v49  ;;  %v3308_v49 = vld [vmem:[#allocation7 + $0x78] sm:$0xff]  }
 0x185   : > { %1709 = vmatprep.mubr.bf16.mxu0 %v542_v54  ;;  %2706 = vmatprep.subr.bf16.mxu1 %v3308_v49 }
 0x186   : > { %2707 = vmatpush3.bf16.msra.mxu1 %v3309_v60 }
 0x18c   : > { %1710 = vmatmul.mubr.bf16.gmra.mrb[36].mxu0 %v541_v6 }
 0x18d   : > { %1750 = vmatprep.mubr.bf16.mxu0 %v472_v58 }
 0x194   : > { %1751 = vmatmul.mubr.bf16.vlgmr.msra.gmra.mrb[0].mxu0 %v471_v62 }
 0x195   : > { %1760 = vmatprep.mubr.bf16.mxu0 %v480_v61 }
 0x19c   : > { %1761 = vmatmul.mubr.bf16.gmra.mrb[4].mxu0 %v479_v7 }
 0x19d   : > { %1770 = vmatprep.mubr.bf16.mxu0 %v488_v10  ;;  %v675_v10 = vlaneseq }
 0x19f   : > { %v676_v12 = vshrl.u32 %v675_v10, 7 }
 0x1a1   : > { %v677_v5 = vsub.s32 0, %v676_v12 }
 0x1a3   : > { %v4249_v50 = vrot.slane %v673_v22, %v677_v5 }
 0x1a4   : > { %1771 = vmatmul.mubr.bf16.gmra.mrb[8].mxu0 %v487_v18 }
 0x1a5   : > { %1780 = vmatprep.mubr.bf16.mxu0 %v496_v14  ;;  %v681_v14 = vsub.s32 1, %v676_v12 }
 0x1a7   : > { %v4238_v16 = vrot.slane %v673_v22, %v681_v14 }
 0x1ac   : > { %1781 = vmatmul.mubr.bf16.gmra.mrb[12].mxu0 %v495_v23 }
 0x1ad   : > { %1790 = vmatprep.mubr.bf16.mxu0 %v504_v30 }
 0x1b4   : > { %1791 = vmatmul.mubr.bf16.gmra.mrb[16].mxu0 %v503_v26 }
 0x1cc   : > { %v4182_v28 = vpop.f32.mrb[0].mxu1 }
 0x1cd   : > { %v4184_v29 = vpop.f32.mrb[1].mxu1 }
 0x1ce   : > { %v4186_v44 = vpop.f32.mrb[2].mxu1 }
 0x1cf   : > { %v4188_v33 = vpop.f32.mrb[3].mxu1 }
 0x1d4   : > { %v4190_v36 = vpop.f32.mrb[4].mxu1 }
 0x1d5   : > { %v4192_v57 = vpop.f32.mrb[5].mxu1 }
 0x1d6   : > { %v4194_v43 = vpop.f32.mrb[6].mxu1 }
 0x1d7   : > { %v4196_v0 = vpop.f32.mrb[7].mxu1 }
 0x1dc   : > { %v4198_v45 = vpop.f32.mrb[8].mxu1 }
 0x1dd   : > { %v4200_v47 = vpop.f32.mrb[9].mxu1 }
 0x1de   : > { %v4202_v15 = vpop.f32.mrb[10].mxu1 }
 0x1df   : > { %v4204_v46 = vpop.f32.mrb[11].mxu1 }
 0x1e4   : > { %v4206_v51 = vpop.f32.mrb[12].mxu1 }
 0x1e5   : > { %v4208_v27 = vpop.f32.mrb[13].mxu1 }
 0x1e6   : > { %v4210_v55 = vpop.f32.mrb[14].mxu1 }
 0x1e7   : > { %v4212_v38 = vpop.f32.mrb[15].mxu1 }
 0x1e8   : > { %4593 = vst [vmem:[#allocation14_spill] sm:$0xff] %v4212_v38 }
 0x1ec   : > { %v4214_v54 = vpop.f32.mrb[16].mxu1 }
 0x1ed   : > { %4594 = vst [vmem:[#allocation15_spill] sm:$0xff] %v4214_v54  ;;  %v4216_v63 = vpop.f32.mrb[17].mxu1 }
 0x1ee   : > { %4595 = vst [vmem:[#allocation16_spill] sm:$0xff] %v4216_v63  ;;  %v4218_v56 = vpop.f32.mrb[18].mxu1 }
 0x1ef   : > { %4596 = vst [vmem:[#allocation17_spill] sm:$0xff] %v4218_v56  ;;  %v4220_v6 = vpop.f32.mrb[19].mxu1 }
 0x1f0   : > { %4597 = vst [vmem:[#allocation18_spill] sm:$0xff] %v4220_v6 }
 0x1f4   : > { %v1409_v58 = vpop.f32.mrb[20].mxu1 }
 0x1f5   : > { %v1411_v34 = vpop.f32.mrb[21].mxu1  ;;  %v1410_v41 = vadd.f32 %v1409_v58, %v4249_v50 }
 0x1f6   : > { %v1413_v9 = vpop.f32.mrb[22].mxu1  ;;  %v1412_v48 = vadd.f32 %v1411_v34, %v4238_v16 }
 0x1f7   : > { %v1415_v59 = vpop.f32.mrb[23].mxu1  ;;  %v1414_v49 = vadd.f32 %v1413_v9, %v4249_v50 }
 0x1f8   : > { %v1416_v10 = vadd.f32 %v1415_v59, %v4238_v16 }
 0x1fc   : > { %v1419_v20 = vpop.f32.mrb[24].mxu1 }
 0x1fd   : > { %v1421_v62 = vpop.f32.mrb[25].mxu1  ;;  %v1420_v54 = vadd.f32 %v1419_v20, %v4249_v50 }
 0x1fe   : > { %v1423_v61 = vpop.f32.mrb[26].mxu1  ;;  %v1422_v38 = vadd.f32 %v1421_v62, %v4238_v16 }
 0x1ff   : > { %v1425_v3 = vpop.f32.mrb[27].mxu1 }
 0x204   : > { %v4222_v1 = vpop.f32.mrb[28].mxu1 }
 0x205   : > { %v4224_v2 = vpop.f32.mrb[29].mxu1 }
 0x206   : > { %v4226_v4 = vpop.f32.mrb[30].mxu1 }
 0x207   : > { %v4228_v7 = vpop.f32.mrb[31].mxu1 }
 0x20c   : > { %v4230_v8 = vpop.f32.mrb[32].mxu1 }
 0x20d   : > { %v4232_v11 = vpop.f32.mrb[33].mxu1 }
 0x20e   : > { %v4234_v13 = vpop.f32.mrb[34].mxu1 }
 0x20f   : > { %v4236_v18 = vpop.f32.mrb[35].mxu1 }
 0x214   : > { %v4240_v19 = vpop.f32.mrb[36].mxu1 }
 0x215   : > { %v1451_v21 = vpop.f32.mrb[37].mxu1 }
 0x216   : > { %v4243_v23 = vadd.f32 %v1451_v21, %v4238_v16  ;;  %v1453_v30 = vpop.f32.mrb[38].mxu1 }
 0x217   : > { %v1454_v32 = vpop.f32.mrb[39].mxu1 }
 0x21c   : > { %v1802_v24 = vpop.f32.mrb[40].mxu1 }
 0x21d   : > { %v1804_v26 = vpop.f32.mrb[41].mxu1 }
 0x21e   : > { %v1806_v39 = vpop.f32.mrb[42].mxu1 }
 0x21f   : > { %v1808_v31 = vpop.f32.mrb[43].mxu1 }
 0x224   : > { %v1812_v35 = vpop.f32.mrb[44].mxu1 }
 0x225   : > { %v1814_v53 = vpop.f32.mrb[45].mxu1 }
 0x226   : > { %v1816_v37 = vpop.f32.mrb[46].mxu1 }
 0x227   : > { %v1818_v40 = vpop.f32.mrb[47].mxu1 }
 0x22c   : > { %v4245_v42 = vpop.f32.mrb[48].mxu1 }
 0x22d   : > { %v4247_v17 = vpop.f32.mrb[49].mxu1 }
 0x22e   : > { %v4251_v25 = vpop.f32.mrb[50].mxu1 }
 0x22f   : > { %v4253_v52 = vpop.f32.mrb[51].mxu1 }
 0x237   : > { %v4258_v60 = vpop.f32.mrb[52].mxu1 }
 0x238   : > { %v4261_v14 = vpop.f32.mrb[53].mxu1 }
 0x239   : > { %v4263_v30 = vpop.f32.mrb[54].mxu1 }
 0x23a   : > { %v4265_v6 = vpop.f32.mrb[55].mxu1 }
 0x23f   : > { %v1671_v12 = vpop.f32.mrb[20].mxu0 }
 0x240   : > { %v2841_v21 = vadd.f32 %v1671_v12, %v1410_v41  ;;  %v1673_v22 = vpop.f32.mrb[21].mxu0  ;;  %v1424_v12 = vadd.f32 %v1423_v61, %v4249_v50 }
 0x241   : > { %v2844_v32 = vadd.f32 %v1673_v22, %v1412_v48  ;;  %v1675_v5 = vpop.f32.mrb[22].mxu0  ;;  %v4270_v48 = vpop.f32.mrb[56].mxu1  ;;  %v1426_v22 = vadd.f32 %v1425_v3, %v4238_v16 }
 0x242   : > { %v2847_v58 = vadd.f32 %v1675_v5, %v1414_v49  ;;  %v2842_v56 = vadd.f32 %v2841_v21, %v1802_v24  ;;  %v1677_v34 = vpop.f32.mrb[23].mxu0  ;;  %v4273_v49 = vpop.f32.mrb[57].mxu1  ;;  %v1430_v5 = vadd.f32 %v4222_v1, %v4249_v50 }
 0x243   : > { %v2850_v63 = vadd.f32 %v1677_v34, %v1416_v10  ;;  %v2845_v9 = vadd.f32 %v2844_v32, %v1804_v26  ;;  %v1846_v20 = vpop.f32.mrb[58].mxu1 }
 0x244   : > { %3310 = vtanh.f32 %v2842_v56  ;;  %v2848_v59 = vadd.f32 %v2847_v58, %v1806_v39  ;;  %v1847_v21 = vpop.f32.mrb[59].mxu1  ;;  %v1432_v58 = vadd.f32 %v4224_v2, %v4238_v16  ;;  %v1440_v20 = vadd.f32 %v4230_v8, %v4249_v50 }
 0x245   : > { %3312 = vtanh.f32 %v2845_v9  ;;  %v2851_v41 = vadd.f32 %v2850_v63, %v1808_v31  ;;  %v1446_v8 = vadd.f32 %v4236_v18, %v4238_v16 }
 0x246   : > { %3314 = vtanh.f32 %v2848_v59 }
 0x247   : > { %3316 = vtanh.f32 %v2851_v41  ;;  %v1681_v24 = vpop.f32.mrb[24].mxu0 }
 0x248   : > { %v2853_v26 = vadd.f32 %v1681_v24, %v1420_v54  ;;  %v1683_v10 = vpop.f32.mrb[25].mxu0 }
 0x249   : > { %v2856_v56 = vadd.f32 %v1683_v10, %v1422_v38  ;;  %v1685_v39 = vpop.f32.mrb[26].mxu0  ;;  %v1434_v38 = vadd.f32 %v4226_v4, %v4249_v50 }
 0x24a   : > { %v2859_v62 = vadd.f32 %v1685_v39, %v1424_v12  ;;  %v2854_v32 = vadd.f32 %v2853_v26, %v1812_v35  ;;  %v1687_v63 = vpop.f32.mrb[27].mxu0  ;;  %v1442_v39 = vadd.f32 %v4232_v11, %v4238_v16 }
 0x24b   : > { %v2862_v31 = vadd.f32 %v1687_v63, %v1426_v22  ;;  %v2857_v61 = vadd.f32 %v2856_v56, %v1814_v53  ;;  %v1436_v53 = vadd.f32 %v4228_v7, %v4238_v16 }
 0x24c   : > { %3318 = vtanh.f32 %v2854_v32  ;;  %v2860_v3 = vadd.f32 %v2859_v62, %v1816_v37  ;;  %v1444_v62 = vadd.f32 %v4234_v13, %v4249_v50 }
 0x24d   : > { %3320 = vtanh.f32 %v2857_v61  ;;  %v2863_v54 = vadd.f32 %v2862_v31, %v1818_v40 }
 0x24e   : > { %v4279_v34 = vpop.eup %3310  ;;  %3322 = vtanh.f32 %v2860_v3 }
 0x24f   : > { %v4283_v35 = vpop.eup %3312  ;;  %3324 = vtanh.f32 %v2863_v54  ;;  %v1691_v1 = vpop.f32.mrb[28].mxu0 }
 0x250   : > { %v4287_v9 = vpop.eup %3314  ;;  %v2865_v37 = vadd.f32 %v1691_v1, %v1430_v5  ;;  %v1693_v59 = vpop.f32.mrb[29].mxu0 }
 0x251   : > { %v4289_v2 = vpop.eup %3316  ;;  %v2868_v40 = vadd.f32 %v1693_v59, %v1432_v58  ;;  %v1695_v41 = vpop.f32.mrb[30].mxu0  ;;  %v1897_v12 = vpack.c.bf16 %v4287_v9, %v4279_v34 }
 0x252   : > { %v2871_v4 = vadd.f32 %v1695_v41, %v1434_v38  ;;  %v2866_v22 = vadd.f32 %v2865_v37, %v4245_v42  ;;  %v1697_v24 = vpop.f32.mrb[31].mxu0  ;;  %v1898_v7 = vpack.c.bf16 %v4289_v2, %v4283_v35 }
 0x253   : > { %v2874_v26 = vadd.f32 %v1697_v24, %v1436_v53  ;;  %v2869_v10 = vadd.f32 %v2868_v40, %v4247_v17  ;;  %v1450_v53 = vadd.f32 %v4240_v19, %v4249_v50 }
 0x254   : > { %3326 = vtanh.f32 %v2866_v22  ;;  %v2872_v56 = vadd.f32 %v2871_v4, %v4251_v25 }
 0x255   : > { %3328 = vtanh.f32 %v2869_v10  ;;  %v2875_v21 = vadd.f32 %v2874_v26, %v4253_v52 }
 0x256   : > { %v4303_v42 = vpop.eup %3318  ;;  %3330 = vtanh.f32 %v2872_v56 }
 0x257   : > { %v4307_v32 = vpop.eup %3320  ;;  %3332 = vtanh.f32 %v2875_v21  ;;  %v1701_v17 = vpop.f32.mrb[32].mxu0  ;;  %v1362_v21 = vadd.f32 %v4184_v29, %v4238_v16 }
 0x258   : > { %v4311_v25 = vpop.eup %3322  ;;  %v2877_v63 = vadd.f32 %v1701_v17, %v1440_v20  ;;  %v1703_v11 = vpop.f32.mrb[33].mxu0 }
 0x259   : > { %v4313_v31 = vpop.eup %3324  ;;  %v2880_v52 = vadd.f32 %v1703_v11, %v1442_v39  ;;  %v1705_v61 = vpop.f32.mrb[34].mxu0  ;;  %v1899_v5 = vpack.c.bf16 %v4311_v25, %v4303_v42  ;;  %v1360_v39 = vadd.f32 %v4182_v28, %v4249_v50  ;;  %v1366_v11 = vadd.f32 %v4188_v33, %v4238_v16 }
 0x25a   : > { %v2883_v13 = vadd.f32 %v1705_v61, %v1444_v62  ;;  %v2878_v3 = vadd.f32 %v2877_v63, %v4258_v60  ;;  %v1707_v58 = vpop.f32.mrb[35].mxu0  ;;  %v1900_v18 = vpack.c.bf16 %v4313_v31, %v4307_v32  ;;  %v1372_v33 = vadd.f32 %v4192_v57, %v4238_v16 }
 0x25b   : > { %v2886_v54 = vadd.f32 %v1707_v58, %v1446_v8  ;;  %v2881_v38 = vadd.f32 %v2880_v52, %v4261_v14  ;;  %v1364_v8 = vadd.f32 %v4186_v44, %v4249_v50  ;;  %v1370_v58 = vadd.f32 %v4190_v36, %v4249_v50 }
 0x25c   : > { %3334 = vtanh.f32 %v2878_v3  ;;  %v2884_v1 = vadd.f32 %v2883_v13, %v4263_v30 }
 0x25d   : > { %3336 = vtanh.f32 %v2881_v38  ;;  %v2887_v37 = vadd.f32 %v2886_v54, %v4265_v6  ;;  %v1374_v38 = vadd.f32 %v4194_v43, %v4249_v50  ;;  %v1380_v43 = vadd.f32 %v4198_v45, %v4249_v50 }
 0x25e   : > { %v4325_v59 = vpop.eup %3326  ;;  %3338 = vtanh.f32 %v2884_v1 }
 0x25f   : > { %v4327_v60 = vpop.eup %3328  ;;  %3340 = vtanh.f32 %v2887_v37  ;;  %v1711_v40 = vpop.f32.mrb[36].mxu0  ;;  %v1376_v37 = vadd.f32 %v4196_v0, %v4238_v16 }
 0x260   : > { %v4329_v41 = vpop.eup %3330  ;;  %v2889_v4 = vadd.f32 %v1711_v40, %v1450_v53  ;;  %v1713_v14 = vpop.f32.mrb[37].mxu0 }
 0x261   : > { %v4331_v22 = vpop.eup %3332  ;;  %v2892_v19 = vadd.f32 %v1713_v14, %v4243_v23  ;;  %v1715_v24 = vpop.f32.mrb[38].mxu0  ;;  %v1901_v30 = vpack.c.bf16 %v4329_v41, %v4325_v59 }
 0x262   : > { %v4337_v6 = vadd.f32 %v2889_v4, %v4270_v48  ;;  %v1716_v26 = vpop.f32.mrb[39].mxu0  ;;  %v1902_v10 = vpack.c.bf16 %v4331_v22, %v4327_v60 }
 0x263   : > { %v4342_v20 = vadd.f32 %v2892_v19, %v4273_v49 }
 0x266   : > { %v4344_v56 = vpop.eup %3334 }
 0x267   : > { %v4348_v23 = vpop.eup %3336  ;;  %v1752_v62 = vpop.f32.mrb[0].mxu0 }
 0x268   : > { %v4352_v48 = vpop.eup %3338  ;;  %v2801_v17 = vadd.f32 %v1752_v62, %v1360_v39  ;;  %v1754_v63 = vpop.f32.mrb[1].mxu0 }
 0x269   : > { %v4356_v49 = vpop.eup %3340  ;;  %v2803_v52 = vadd.f32 %v1754_v63, %v1362_v21  ;;  %v1756_v28 = vpop.f32.mrb[2].mxu0  ;;  %v1903_v61 = vpack.c.bf16 %v4352_v48, %v4344_v56  ;;  %v1382_v21 = vadd.f32 %v4200_v47, %v4238_v16 }
 0x26a   : > { %3342 = vtanh.f32 %v2801_v17  ;;  %v2805_v29 = vadd.f32 %v1756_v28, %v1364_v8  ;;  %v1758_v13 = vpop.f32.mrb[3].mxu0  ;;  %v1904_v3 = vpack.c.bf16 %v4356_v49, %v4348_v23  ;;  %v1384_v8 = vadd.f32 %v4202_v15, %v4249_v50 }
 0x26b   : > { %3344 = vtanh.f32 %v2803_v52  ;;  %v2807_v44 = vadd.f32 %v1758_v13, %v1366_v11  ;;  %v1386_v52 = vadd.f32 %v4204_v46, %v4238_v16  ;;  %v1392_v46 = vadd.f32 %v4208_v27, %v4238_v16 }
 0x26c   : > { %3346 = vtanh.f32 %v2805_v29 }
 0x26d   : > { %3348 = vtanh.f32 %v2807_v44 }
 0x26f   : > { %v1762_v54 = vpop.f32.mrb[4].mxu0 }
 0x270   : > { %v2809_v53 = vadd.f32 %v1762_v54, %v1370_v58  ;;  %v1764_v1 = vpop.f32.mrb[5].mxu0 }
 0x271   : > { %v2811_v40 = vadd.f32 %v1764_v1, %v1372_v33  ;;  %v1766_v4 = vpop.f32.mrb[6].mxu0  ;;  %v1390_v33 = vadd.f32 %v4206_v51, %v4249_v50  ;;  %v1394_v1 = vadd.f32 %v4210_v55, %v4249_v50 }
 0x272   : > { %3350 = vtanh.f32 %v2809_v53  ;;  %v2813_v14 = vadd.f32 %v1766_v4, %v1374_v38  ;;  %v1768_v19 = vpop.f32.mrb[7].mxu0 }
 0x273   : > { %3352 = vtanh.f32 %v2811_v40  ;;  %v2815_v24 = vadd.f32 %v1768_v19, %v1376_v37 }
 0x274   : > { %v3343_v36 = vpop.eup %3342  ;;  %3354 = vtanh.f32 %v2813_v14  ;;  %v4598_v14 = vld [vmem:[#allocation14_spill] sm:$0xff] }
 0x275   : > { %v3345_v26 = vpop.eup %3344  ;;  %3356 = vtanh.f32 %v2815_v24  ;;  %v1396_v19 = vadd.f32 %v4598_v14, %v4238_v16 }
 0x276   : > { %v3347_v57 = vpop.eup %3346 }
 0x277   : > { %v3349_v39 = vpop.eup %3348  ;;  %v1772_v0 = vpop.f32.mrb[8].mxu0  ;;  %v1887_v62 = vpack.c.bf16 %v3347_v57, %v3343_v36 }
 0x278   : > { %v2817_v17 = vadd.f32 %v1772_v0, %v1380_v43  ;;  %v1774_v63 = vpop.f32.mrb[9].mxu0  ;;  %v1888_v11 = vpack.c.bf16 %v3349_v39, %v3345_v26  ;;  %v4599_v39 = vld [vmem:[#allocation15_spill] sm:$0xff] }
 0x279   : > { %v2819_v28 = vadd.f32 %v1774_v63, %v1382_v21  ;;  %v1776_v29 = vpop.f32.mrb[10].mxu0  ;;  %v1400_v21 = vadd.f32 %v4599_v39, %v4249_v50 }
 0x27a   : > { %3358 = vtanh.f32 %v2817_v17  ;;  %v2821_v13 = vadd.f32 %v1776_v29, %v1384_v8  ;;  %v1778_v45 = vpop.f32.mrb[11].mxu0  ;;  %2074 = vmatprep.mubr.bf16.mxu1 %v1888_v11  ;;  %v4601_v11 = vld [vmem:[#allocation17_spill] sm:$0xff] }
 0x27b   : > { %3360 = vtanh.f32 %v2819_v28  ;;  %v2823_v44 = vadd.f32 %v1778_v45, %v1386_v52  ;;  %2075 = vmatmul.mubr.bf16.vlgmr.msra.gmra.mrb[60].mxu1 %v1887_v62  ;;  %v4600_v62 = vld [vmem:[#allocation16_spill] sm:$0xff]  ;;  %v1404_v52 = vadd.f32 %v4601_v11, %v4249_v50  ;;  %v4602_v45 = vld [vmem:[#allocation18_spill] sm:$0xff] }
 0x27c   : > { %v3351_v47 = vpop.eup %3350  ;;  %3362 = vtanh.f32 %v2821_v13  ;;  %v1402_v8 = vadd.f32 %v4600_v62, %v4238_v16 }
 0x27d   : > { %v3353_v58 = vpop.eup %3352  ;;  %3364 = vtanh.f32 %v2823_v44  ;;  %v1406_v44 = vadd.f32 %v4602_v45, %v4238_v16 }
 0x27e   : > { %v3355_v15 = vpop.eup %3354 }
 0x27f   : > { %v3357_v54 = vpop.eup %3356  ;;  %v1782_v38 = vpop.f32.mrb[12].mxu0  ;;  %v1889_v53 = vpack.c.bf16 %v3355_v15, %v3351_v47 }
 0x280   : > { %v2825_v37 = vadd.f32 %v1782_v38, %v1390_v33  ;;  %v1784_v40 = vpop.f32.mrb[13].mxu0  ;;  %v1890_v4 = vpack.c.bf16 %v3357_v54, %v3353_v58 }
 0x281   : > { %v2827_v24 = vadd.f32 %v1784_v40, %v1392_v46  ;;  %v1786_v36 = vpop.f32.mrb[14].mxu0 }
 0x282   : > { %3366 = vtanh.f32 %v2825_v37  ;;  %v2829_v26 = vadd.f32 %v1786_v36, %v1394_v1  ;;  %v1788_v51 = vpop.f32.mrb[15].mxu0  ;;  %2082 = vmatprep.mubr.bf16.mxu1 %v1890_v4 }
 0x283   : > { %3368 = vtanh.f32 %v2827_v24  ;;  %v2831_v57 = vadd.f32 %v1788_v51, %v1396_v19  ;;  %2083 = vmatmul.mubr.bf16.gmra.mrb[64].mxu1 %v1889_v53 }
 0x284   : > { %v3359_v27 = vpop.eup %3358  ;;  %3370 = vtanh.f32 %v2829_v26 }
 0x285   : > { %v3361_v43 = vpop.eup %3360  ;;  %3372 = vtanh.f32 %v2831_v57 }
 0x286   : > { %v3363_v55 = vpop.eup %3362 }
 0x287   : > { %v3365_v0 = vpop.eup %3364  ;;  %v1792_v17 = vpop.f32.mrb[16].mxu0  ;;  %v1891_v63 = vpack.c.bf16 %v3363_v55, %v3359_v27 }
 0x288   : > { %v2833_v28 = vadd.f32 %v1792_v17, %v1400_v21  ;;  %v1794_v29 = vpop.f32.mrb[17].mxu0  ;;  %v1892_v13 = vpack.c.bf16 %v3365_v0, %v3361_v43 }
 0x289   : > { %v2835_v47 = vadd.f32 %v1794_v29, %v1402_v8  ;;  %v1796_v58 = vpop.f32.mrb[18].mxu0 }
 0x28a   : > { %3374 = vtanh.f32 %v2833_v28  ;;  %v2837_v15 = vadd.f32 %v1796_v58, %v1404_v52  ;;  %v1798_v33 = vpop.f32.mrb[19].mxu0  ;;  %2090 = vmatprep.mubr.bf16.mxu1 %v1892_v13 }
 0x28b   : > { %3376 = vtanh.f32 %v2835_v47  ;;  %v2839_v54 = vadd.f32 %v1798_v33, %v1406_v44  ;;  %2091 = vmatmul.mubr.bf16.gmra.mrb[68].mxu1 %v1891_v63 }
 0x28c   : > { %v3367_v46 = vpop.eup %3366  ;;  %3378 = vtanh.f32 %v2837_v15 }
 0x28d   : > { %v3369_v38 = vpop.eup %3368  ;;  %3380 = vtanh.f32 %v2839_v54 }
 0x28e   : > { %v3371_v50 = vpop.eup %3370  ;;  %3382 = vtanh.f32 %v4342_v20 }
 0x28f   : > { %v3373_v53 = vpop.eup %3372  ;;  %v1893_v1 = vpack.c.bf16 %v3371_v50, %v3367_v46  ;;  %3384 = vtanh.f32 %v4337_v6 }
 0x290   : > { %v1894_v37 = vpack.c.bf16 %v3373_v53, %v3369_v38 }
 0x292   : > { %2098 = vmatprep.mubr.bf16.mxu1 %v1894_v37 }
 0x293   : > { %2099 = vmatmul.mubr.bf16.gmra.mrb[72].mxu1 %v1893_v1 }
 0x294   : > { %v3375_v16 = vpop.eup %3374 }
 0x295   : > { %v3377_v40 = vpop.eup %3376 }
 0x296   : > { %v3379_v4 = vpop.eup %3378 }
 0x297   : > { %v3381_v14 = vpop.eup %3380  ;;  %v1895_v19 = vpack.c.bf16 %v3379_v4, %v3375_v16 }
 0x298   : > { %v1896_v24 = vpack.c.bf16 %v3381_v14, %v3377_v40  ;;  %v3383_v34 = vpop.eup %3382 }
 0x299   : > { %v1906_v35 = vpack.c.bf16 %v3383_v34, %v3383_v34  ;;  %v3385_v9 = vpop.eup %3384 }
 0x29a   : > { %2106 = vmatprep.mubr.bf16.mxu1 %v1896_v24  ;;  %v1905_v2 = vpack.c.bf16 %v3385_v9, %v3385_v9 }
 0x29b   : > { %2107 = vmatmul.mubr.bf16.gmra.mrb[76].mxu1 %v1895_v19 }
 0x29c   : > { %2114 = vmatprep.mubr.bf16.mxu1 %v1898_v7  ;;  %v4423_v7 = vld [vmem:[#allocation9] ss:$0 sm:$0xff] }
 0x2a3   : > { %2115 = vmatmul.mubr.bf16.gmra.mrb[80].mxu1 %v1897_v12 }
 0x2a4   : > { %2122 = vmatprep.mubr.bf16.mxu1 %v1900_v18 }
 0x2ab   : > { %2123 = vmatmul.mubr.bf16.gmra.mrb[84].mxu1 %v1899_v5 }
 0x2ac   : > { %2130 = vmatprep.mubr.bf16.mxu1 %v1902_v10 }
 0x2b3   : > { %2131 = vmatmul.mubr.bf16.gmra.mrb[88].mxu1 %v1901_v30 }
 0x2b4   : > { %2138 = vmatprep.mubr.bf16.mxu1 %v1904_v3 }
 0x2bb   : > { %2139 = vmatmul.mubr.bf16.gmra.mrb[92].mxu1 %v1903_v61 }
 0x2bc   : > { %2146 = vmatprep.mubr.bf16.mxu1 %v1906_v35 }
 0x2c3   : > { %2147 = vmatmul.mubr.bf16.gmra.mrb[96].mxu1 %v1905_v2 }
 0x34e   : > { %v2708_v12 = vpop.f32.mrb[60].mxu1 }
 0x34f   : > { %v2709_v42 = vpop.f32.mrb[61].mxu1 }
 0x350   : > { %v2710_v32 = vadd.f32 %v2709_v42, %v2708_v12  ;;  %v2711_v25 = vpop.f32.mrb[62].mxu1 }
 0x351   : > { %v2712_v31 = vpop.f32.mrb[63].mxu1 }
 0x352   : > { %v2077_v5 = vadd.f32 %v2710_v32, %v4423_v7  ;;  %v2713_v18 = vadd.f32 %v2712_v31, %v2711_v25 }
 0x354   : > { %2154 = vst [vmem:[%s4426_s30] sm:$0xff] %v2077_v5  ;;  %v2080_v59 = vadd.f32 %v2713_v18, %v4423_v7 }
 0x356   : > { %2155 = vst [vmem:[%s4426_s30 + $0x8] sm:$0xff] %v2080_v59  ;;  %v2714_v60 = vpop.f32.mrb[64].mxu1 }
 0x357   : > { %v2715_v41 = vpop.f32.mrb[65].mxu1 }
 0x358   : > { %v2716_v22 = vadd.f32 %v2715_v41, %v2714_v60  ;;  %v2717_v30 = vpop.f32.mrb[66].mxu1 }
 0x359   : > { %v2718_v6 = vpop.f32.mrb[67].mxu1 }
 0x35a   : > { %v2085_v10 = vadd.f32 %v2716_v22, %v4423_v7  ;;  %v2719_v20 = vadd.f32 %v2718_v6, %v2717_v30 }
 0x35c   : > { %2156 = vst [vmem:[%s4426_s30 + $0x10] sm:$0xff] %v2085_v10  ;;  %v2088_v56 = vadd.f32 %v2719_v20, %v4423_v7 }
 0x35e   : > { %2157 = vst [vmem:[%s4426_s30 + $0x18] sm:$0xff] %v2088_v56  ;;  %v2720_v23 = vpop.f32.mrb[68].mxu1 }
 0x35f   : > { %v2721_v48 = vpop.f32.mrb[69].mxu1 }
 0x360   : > { %v2722_v49 = vadd.f32 %v2721_v48, %v2720_v23  ;;  %v2723_v61 = vpop.f32.mrb[70].mxu1 }
 0x361   : > { %v2724_v3 = vpop.f32.mrb[71].mxu1 }
 0x362   : > { %v2093_v36 = vadd.f32 %v2722_v49, %v4423_v7  ;;  %v2725_v26 = vadd.f32 %v2724_v3, %v2723_v61 }
 0x364   : > { %2158 = vst [vmem:[%s4426_s30 + $0x20] sm:$0xff] %v2093_v36  ;;  %v2096_v51 = vadd.f32 %v2725_v26, %v4423_v7 }
 0x366   : > { %2159 = vst [vmem:[%s4426_s30 + $0x28] sm:$0xff] %v2096_v51  ;;  %v2726_v57 = vpop.f32.mrb[72].mxu1 }
 0x367   : > { %v2727_v27 = vpop.f32.mrb[73].mxu1 }
 0x368   : > { %v2728_v43 = vadd.f32 %v2727_v27, %v2726_v57  ;;  %v2729_v55 = vpop.f32.mrb[74].mxu1 }
 0x369   : > { %v2730_v39 = vpop.f32.mrb[75].mxu1 }
 0x36a   : > { %v2101_v21 = vadd.f32 %v2728_v43, %v4423_v7  ;;  %v2731_v0 = vadd.f32 %v2730_v39, %v2729_v55 }
 0x36c   : > { %2160 = vst [vmem:[%s4426_s30 + $0x30] sm:$0xff] %v2101_v21  ;;  %v2104_v62 = vadd.f32 %v2731_v0, %v4423_v7 }
 0x36e   : > { %2161 = vst [vmem:[%s4426_s30 + $0x38] sm:$0xff] %v2104_v62  ;;  %v2732_v8 = vpop.f32.mrb[76].mxu1 }
 0x36f   : > { %v2733_v17 = vpop.f32.mrb[77].mxu1 }
 0x370   : > { %v2734_v63 = vadd.f32 %v2733_v17, %v2732_v8  ;;  %v2735_v11 = vpop.f32.mrb[78].mxu1 }
 0x371   : > { %v2736_v52 = vpop.f32.mrb[79].mxu1 }
 0x372   : > { %v2109_v28 = vadd.f32 %v2734_v63, %v4423_v7  ;;  %v2737_v29 = vadd.f32 %v2736_v52, %v2735_v11 }
 0x374   : > { %2162 = vst [vmem:[%s4426_s30 + $0x40] sm:$0xff] %v2109_v28  ;;  %v2112_v13 = vadd.f32 %v2737_v29, %v4423_v7 }
 0x376   : > { %2163 = vst [vmem:[%s4426_s30 + $0x48] sm:$0xff] %v2112_v13  ;;  %v2738_v45 = vpop.f32.mrb[80].mxu1 }
 0x377   : > { %v2739_v44 = vpop.f32.mrb[81].mxu1 }
 0x378   : > { %v2740_v47 = vadd.f32 %v2739_v44, %v2738_v45  ;;  %v2741_v58 = vpop.f32.mrb[82].mxu1 }
 0x379   : > { %v2742_v15 = vpop.f32.mrb[83].mxu1 }
 0x37a   : > { %v2117_v33 = vadd.f32 %v2740_v47, %v4423_v7  ;;  %v2743_v54 = vadd.f32 %v2742_v15, %v2741_v58 }
 0x37c   : > { %2164 = vst [vmem:[%s4426_s30 + $0x50] sm:$0xff] %v2117_v33  ;;  %v2120_v46 = vadd.f32 %v2743_v54, %v4423_v7 }
 0x37e   : > { %2165 = vst [vmem:[%s4426_s30 + $0x58] sm:$0xff] %v2120_v46  ;;  %v2744_v38 = vpop.f32.mrb[84].mxu1 }
 0x37f   : > { %v2745_v50 = vpop.f32.mrb[85].mxu1 }
 0x380   : > { %v2746_v53 = vadd.f32 %v2745_v50, %v2744_v38  ;;  %v2747_v1 = vpop.f32.mrb[86].mxu1 }
 0x381   : > { %v2748_v37 = vpop.f32.mrb[87].mxu1 }
 0x382   : > { %v2125_v16 = vadd.f32 %v2746_v53, %v4423_v7  ;;  %v2749_v40 = vadd.f32 %v2748_v37, %v2747_v1 }
 0x384   : > { %2166 = vst [vmem:[%s4426_s30 + $0x60] sm:$0xff] %v2125_v16  ;;  %v2128_v4 = vadd.f32 %v2749_v40, %v4423_v7 }
 0x386   : > { %2167 = vst [vmem:[%s4426_s30 + $0x68] sm:$0xff] %v2128_v4  ;;  %v2750_v14 = vpop.f32.mrb[88].mxu1 }
 0x387   : > { %v2751_v19 = vpop.f32.mrb[89].mxu1 }
 0x388   : > { %v2752_v24 = vadd.f32 %v2751_v19, %v2750_v14  ;;  %v2753_v34 = vpop.f32.mrb[90].mxu1 }
 0x389   : > { %v2754_v35 = vpop.f32.mrb[91].mxu1 }
 0x38a   : > { %v2133_v9 = vadd.f32 %v2752_v24, %v4423_v7  ;;  %v2755_v2 = vadd.f32 %v2754_v35, %v2753_v34 }
 0x38c   : > { %2168 = vst [vmem:[%s4426_s30 + $0x70] sm:$0xff] %v2133_v9  ;;  %v2136_v12 = vadd.f32 %v2755_v2, %v4423_v7 }
 0x38e   : > { %2169 = vst [vmem:[%s4426_s30 + $0x78] sm:$0xff] %v2136_v12  ;;  %v2756_v42 = vpop.f32.mrb[92].mxu1 }
 0x38f   : > { %v2757_v32 = vpop.f32.mrb[93].mxu1 }
 0x390   : > { %v2758_v25 = vadd.f32 %v2757_v32, %v2756_v42  ;;  %v2759_v31 = vpop.f32.mrb[94].mxu1 }
 0x391   : > { %v2760_v5 = vpop.f32.mrb[95].mxu1 }
 0x392   : > { %v2141_v18 = vadd.f32 %v2758_v25, %v4423_v7  ;;  %v2761_v59 = vadd.f32 %v2760_v5, %v2759_v31 }
 0x394   : > { %2170 = vst [vmem:[%s4426_s30 + $0x80] sm:$0xff] %v2141_v18  ;;  %v2144_v60 = vadd.f32 %v2761_v59, %v4423_v7 }
 0x396   : > { %2171 = vst [vmem:[%s4426_s30 + $0x88] sm:$0xff] %v2144_v60  ;;  %v2762_v41 = vpop.f32.mrb[96].mxu1  ;;  %2179 = sbr.rel (!%p4603_p9) target bundleno = 988 (0x3dc), region = 64 }
 0x397   : > { %v2763_v22 = vpop.f32.mrb[97].mxu1 }
 0x398   : > { %v2764_v30 = vadd.f32 %v2763_v22, %v2762_v41  ;;  %v2765_v6 = vpop.f32.mrb[98].mxu1 }
 0x399   : > { %v2766_v10 = vpop.f32.mrb[99].mxu1 }
 0x39a   : > { %v2149_v20 = vadd.f32 %v2764_v30, %v4423_v7 }
 0x39c   : > { %2172 = vst [vmem:[%s4426_s30 + $0x90] sm:$0xff] %v2149_v20 }
 0x39d   : > { %s4614_s17 = smov (!%p2182_p12, %s2181_s17), 19 }
 0x39e   : > { %s2675_s25 = sshll.u32 %s4614_s17, 7 }
 0x39f   : > { %p2678_p0 = scmp.eq.s32.totalorder %s2675_s25, 0 }
 0x3a0   : > { %3386 = sdivrem.u32 (!%p2678_p0), %s4614_s17, 19 }
 0x3a1   : > { %2190 = sbr.rel (%p2678_p0) target bundleno = 988 (0x3dc), region = 68 }
 0x3a9   : > { %s4478_s29 = spop.drf %3386 }
 0x3aa   : > { %p2679_p1 = scmp.le.s32.totalorder %s4478_s29, 0 }
 0x3ab   : > { %s4604_s22 = smov (!%p2679_p1), %s4472_s21  ;;  %s4605_s16 = smov (!%p2679_p1), %s4426_s30 }
 0x3ac   : > { %2428 = sbr.rel (%p2679_p1) target bundleno = 959 (0x3bf), region = 150  ;;  %s4487_s1 = smov (!%p2679_p1), 0  }
 0x3ad   : > { %s4489_s6 = smov (!%p2679_p1), 0  }
 0x3b3 LB: >> { %v2290_v7 = vld [vmem:[%s3612_s16] sm:$0xff]  ;;  %v2292_v56 = vld [vmem:[%s3612_s16 + $0x8] sm:$0xff]  ;;  %v2294_v23 = vld [vmem:[%s3612_s16 + $0x10] sm:$0xff]  ;;  %s2328_s11 = sadd.s32 1, %s3616_s1  ;;  %s2284_s6 = sadd.s32 1, %s3620_s6   ;;  %s3620_s6 = sphi %s4489_s6, %s2284_s6   ;;  %s3616_s1 = sphi %s4487_s1, %s4606_s1   ;;  %s3612_s16 = sphi %s4605_s16, %s2333_s16   ;;  %s3608_s22 = sphi %s4604_s22, %s2334_s22  }
 0x3b4   : >> { %2291 = vst [vmem:[%s3608_s22] sm:$0xff] %v2290_v7  ;;  %2293 = vst [vmem:[%s3608_s22 + $0x8] sm:$0xff] %v2292_v56  ;;  %v2296_v48 = vld [vmem:[%s3612_s16 + $0x18] sm:$0xff]  ;;  %v2298_v49 = vld [vmem:[%s3612_s16 + $0x20] sm:$0xff]  ;;  %p2329_p5 = scmp.ge.s32.totalorder %s2328_s11, %s4478_s29  ;;  %p2283_p4 = scmp.ge.s32.totalorder %s2284_s6, %s4478_s29 }
 0x3b5   : >> { %2295 = vst [vmem:[%s3608_s22 + $0x10] sm:$0xff] %v2294_v23  ;;  %v2300_v61 = vld [vmem:[%s3612_s16 + $0x28] sm:$0xff]  ;;  %2297 = vst [vmem:[%s3608_s22 + $0x18] sm:$0xff] %v2296_v48  ;;  %v2302_v3 = vld [vmem:[%s3612_s16 + $0x30] sm:$0xff] }
 0x3b6   : >> { %2299 = vst [vmem:[%s3608_s22 + $0x20] sm:$0xff] %v2298_v49  ;;  %2301 = vst [vmem:[%s3608_s22 + $0x28] sm:$0xff] %v2300_v61  ;;  %v2304_v36 = vld [vmem:[%s3612_s16 + $0x38] sm:$0xff]  ;;  %v2306_v26 = vld [vmem:[%s3612_s16 + $0x40] sm:$0xff]  ;;  %s4616_s11 = smov (%p2329_p5, %s2328_s11), 0 }
 0x3b7   : >> { %2303 = vst [vmem:[%s3608_s22 + $0x30] sm:$0xff] %v2302_v3  ;;  %2305 = vst [vmem:[%s3608_s22 + $0x38] sm:$0xff] %v2304_v36  ;;  %v2308_v51 = vld [vmem:[%s3612_s16 + $0x48] sm:$0xff]  ;;  %v2310_v57 = vld [vmem:[%s3612_s16 + $0x50] sm:$0xff]  ;;  %s2331_s12 = smul.u32 152, %s4616_s11  ;;  %s4606_s1 = smov %s4616_s11 }
 0x3b8   : >> { %2307 = vst [vmem:[%s3608_s22 + $0x40] sm:$0xff] %v2306_v26  ;;  %v2312_v27 = vld [vmem:[%s3612_s16 + $0x58] sm:$0xff]  ;;  %2309 = vst [vmem:[%s3608_s22 + $0x48] sm:$0xff] %v2308_v51  ;;  %v2314_v43 = vld [vmem:[%s3612_s16 + $0x60] sm:$0xff]  ;;  %2286 = sbr.rel (!%p2283_p4) target bundleno = 947 (0x3b3), region = 156 }
 0x3b9   : >> { %2311 = vst [vmem:[%s3608_s22 + $0x50] sm:$0xff] %v2310_v57  ;;  %2313 = vst [vmem:[%s3608_s22 + $0x58] sm:$0xff] %v2312_v27  ;;  %v2316_v55 = vld [vmem:[%s3612_s16 + $0x68] sm:$0xff]  ;;  %v2318_v39 = vld [vmem:[%s3612_s16 + $0x70] sm:$0xff] }
 0x3ba   : >> { %2315 = vst [vmem:[%s3608_s22 + $0x60] sm:$0xff] %v2314_v43  ;;  %2317 = vst [vmem:[%s3608_s22 + $0x68] sm:$0xff] %v2316_v55  ;;  %v2320_v21 = vld [vmem:[%s3612_s16 + $0x78] sm:$0xff]  ;;  %v2322_v0 = vld [vmem:[%s3612_s16 + $0x80] sm:$0xff] }
 0x3bb   : >> { %2319 = vst [vmem:[%s3608_s22 + $0x70] sm:$0xff] %v2318_v39  ;;  %v2324_v62 = vld [vmem:[%s3612_s16 + $0x88] sm:$0xff]  ;;  %2321 = vst [vmem:[%s3608_s22 + $0x78] sm:$0xff] %v2320_v21  ;;  %v2326_v8 = vld [vmem:[%s3612_s16 + $0x90] sm:$0xff]  ;;  %s2333_s16 = scalar_lea.vmem %s4426_s30, %s2331_s12 [#allocation10]  }
 0x3bc   : >> { %2323 = vst [vmem:[%s3608_s22 + $0x80] sm:$0xff] %v2322_v0  ;;  %2325 = vst [vmem:[%s3608_s22 + $0x88] sm:$0xff] %v2324_v62 }
 0x3bd   : >> { %2327 = vst [vmem:[%s3608_s22 + $0x90] sm:$0xff] %v2326_v8  ;;  %s2334_s22 = scalar_lea.vmem %s4472_s21, %s2331_s12  }
 0x3bf PF: > { %3388 = sdivrem.u32 %s4614_s17, 19 }
 0x3c0   : > { %s2680_s15 = smul.u32 152, %s4478_s29 }
 0x3c2   : > { %s2339_s27 = scalar_lea.vmem %s4426_s30, %s2680_s15 [#allocation10]   ;;  %s2341_s18 = scalar_lea.vmem %s4472_s21, %s2680_s15  }
 0x3c8   : > { %s3389_s24 = spop.drf %3388 }
 0x3c9   : > { %p2682_p8 = scmp.le.s32.totalorder %s3389_s24, 0 }
 0x3ca   : > { %s3622_s13 = smov (!%p2682_p8), %s2341_s18   ;;  %s3626_s9 = smov (!%p2682_p8), %s2339_s27  }
 0x3cb   : > { %2442 = sbr.rel (%p2682_p8) target bundleno = 988 (0x3dc), region = 161  ;;  %s3630_s28 = smov (!%p2682_p8), 0  }
 0x3cc   : > { %s3634_s8 = smov (!%p2682_p8), 0  }
 0x3d2 LB: >> { %v2351_v17 = vld [vmem:[%s3628_s9] sm:$0xff]  ;;  %s2353_s14 = sadd.s32 1, %s3632_s28  ;;  %s2345_s8 = sadd.s32 1, %s3636_s8   ;;  %s3636_s8 = sphi %s3634_s8, %s2345_s8   ;;  %s3632_s28 = sphi %s3630_s28, %s3631_s28   ;;  %s3628_s9 = sphi %s3626_s9, %s2358_s9   ;;  %s3624_s13 = sphi %s3622_s13, %s2359_s13  }
 0x3d3   : >> { %2352 = vst [vmem:[%s3624_s13] sm:$0xff] %v2351_v17  ;;  %p2354_p11 = scmp.ge.s32.totalorder %s2353_s14, %s3389_s24  ;;  %p2344_p10 = scmp.ge.s32.totalorder %s2345_s8, %s3389_s24 }
 0x3d5   : >> { %s4618_s14 = smov (%p2354_p11, %s2353_s14), 0  ;;  %2347 = sbr.rel (!%p2344_p10) target bundleno = 978 (0x3d2), region = 167 }
 0x3d6   : >> { %s2683_s30 = sshll.u32 %s4618_s14, 3  ;;  %s3631_s28 = smov %s4618_s14  }
 0x3d7   : >> { %s2358_s9 = scalar_lea.vmem %s2339_s27, %s2683_s30 [#allocation10]   ;;  %s2359_s13 = scalar_lea.vmem %s2341_s18, %s2683_s30  }
 0x3dc PF: > { %p17_p2 = scmp.ge.s32.totalorder %s3701_s23, 6   ;;  %s4607_s18 = smov %s3596_s19 }
 0x3dd   : > { %s4608_s19 = smov %s3600_s20  ;;  %s4609_s20 = smov %s3711_s26 }
 0x3de   : > { %s4610_s21 = smov %s3701_s23  ;;  %19 = sbr.rel (!%p17_p2) target bundleno = 7 (0x7), region = 178 }
 0x3e5   :  { %2375 = vsyncpa [#allocation3], 1 }
 0x3e6   :  { %2377 = vsyncpa [#allocation3 + $0x1], 1 }
 0x3e7   :  { %2378 = vsyncpa [#allocation5], 1 }
 0x3e8   :  { %2379 = vsyncpa [#allocation8], 1 }

</bundles_post_ra>
